<compile_context>
chip_gen: v6e
topology: v6e:2x2x1
jax: 0.10.0
libtpu: 0.0.40
codegen_flags: <defaults>
</compile_context>

<pallas_src>
import jax
import jax.numpy as jnp
from jax.experimental import pallas as pl
from jax.experimental.pallas import tpu as pltpu


def encoder_kernel(x_ref, w1_ref, b1_ref, w2_ref, b2_ref, wh_ref, bh_ref,
                   out_ref):
    # fc1 + ReLU  (bf16 operands on the MXU, f32 accumulation + f32 epilogue,
    # intermediate staged as bf16)
    h1 = jnp.dot(x_ref[...], w1_ref[...], preferred_element_type=jnp.float32)
    h1 = jnp.maximum(h1 + b1_ref[...], 0.0).astype(jnp.bfloat16)   # (TB, 512)

    # fc2 + ReLU
    h2 = jnp.dot(h1, w2_ref[...], preferred_element_type=jnp.float32)
    h2 = jnp.maximum(h2 + b2_ref[...], 0.0).astype(jnp.bfloat16)   # (TB, 256)

    # fused, lane-padded heads: single (256, Lp) matmul, full-width store;
    # mean/logvar are split with static slices in the wrapper.
    out = jnp.dot(h2, wh_ref[...], preferred_element_type=jnp.float32)
    out_ref[...] = (out + bh_ref[...]).astype(out_ref.dtype)       # (TB, Lp)


def _pick_tb(B):
    """Row-block size.  Full batch for small B (block == full dim is always a
    legal block shape); otherwise a multiple of 128 rows, capped at 512, sized
    so there are at least two row blocks (v7x megacore)."""
    if B <= 128:
        return B
    half = pl.cdiv(B, 2)
    return min(512, 128 * pl.cdiv(half, 128))


def encoder_forward(x_nchw, params):
    """x_nchw: (B, C, H, W).  Returns (mean, logvar), each (B, latent) f32."""
    B = x_nchw.shape[0]
    # One bf16 cast in the wrapper: halves activation HBM traffic into the
    # kernel (the kernel consumed x as bf16 anyway).
    x_flat = x_nchw.reshape(B, -1).astype(jnp.bfloat16)      # torch .view order
    F_in = x_flat.shape[1]

    w1, b1 = params["w1"], params["b1"]
    w2, b2 = params["w2"], params["b2"]
    wh, bh = params["wh"], params["bh"]
    H1, H2 = w1.shape[1], w2.shape[1]
    Lp = wh.shape[1]                 # lane-padded fused head width (>= 2L)
    L = params["latent_dim"]

    TB = _pick_tb(B)
    n_blocks = pl.cdiv(B, TB)        # ragged last block handled by Pallas

    flops = 2 * B * (F_in * H1 + H1 * H2 + H2 * Lp)
    bytes_accessed = int(
        x_flat.size * x_flat.dtype.itemsize
        + sum(int(p.size) * p.dtype.itemsize for p in (w1, b1, w2, b2, wh, bh))
        + B * Lp * 4
    )

    out = pl.pallas_call(
        encoder_kernel,
        out_shape=jax.ShapeDtypeStruct((B, Lp), jnp.float32),
        grid_spec=pltpu.PrefetchScalarGridSpec(
            num_scalar_prefetch=0,
            grid=(n_blocks,),
            in_specs=[
                pl.BlockSpec((TB, F_in), lambda i: (i, 0)),   # activations
                pl.BlockSpec((F_in, H1), lambda i: (0, 0)),   # w1 (resident)
                pl.BlockSpec((1, H1), lambda i: (0, 0)),      # b1
                pl.BlockSpec((H1, H2), lambda i: (0, 0)),     # w2 (resident)
                pl.BlockSpec((1, H2), lambda i: (0, 0)),      # b2
                pl.BlockSpec((H2, Lp), lambda i: (0, 0)),     # fused head W
                pl.BlockSpec((1, Lp), lambda i: (0, 0)),      # fused head b
            ],
            out_specs=pl.BlockSpec((TB, Lp), lambda i: (i, 0)),
        ),
        compiler_params=pltpu.CompilerParams(
            dimension_semantics=("parallel",)),
        cost_estimate=pl.CostEstimate(
            flops=flops, transcendentals=0, bytes_accessed=bytes_accessed),
    )(x_flat, w1, b1, w2, b2, wh, bh)

    return out[:, :L], out[:, L:2 * L]


def init_params(key, input_shape, latent_dim):
    """Deterministic synthetic parameters.  Shapes mirror nn.Linear but are
    stored transposed as (in, out); the two heads are fused into one weight,
    zero-padded to a 128-lane multiple, and weights are cast to bf16 once
    here (biases stay f32)."""
    F_in = int(input_shape[0] * input_shape[1] * input_shape[2])

    def linear(k, fan_in, fan_out):
        kw, kb = jax.random.split(k)
        bound = 1.0 / jnp.sqrt(fan_in)
        w = jax.random.uniform(kw, (fan_in, fan_out), jnp.float32, -bound, bound)
        b = jax.random.uniform(kb, (1, fan_out), jnp.float32, -bound, bound)
        return w, b

    key, k1, k2, k3, k4 = jax.random.split(key, 5)
    w1, b1 = linear(k1, F_in, 512)
    w2, b2 = linear(k2, 512, 256)
    wm, bm = linear(k3, 256, latent_dim)
    wl, bl = linear(k4, 256, latent_dim)

    wh = jnp.concatenate([wm, wl], axis=1)   # (256, 2L)
    bh = jnp.concatenate([bm, bl], axis=1)   # (1, 2L)

    # Pad fused head to a 128-lane multiple so the kernel's output store is
    # full-width (no masked vst.msk).
    two_l = 2 * latent_dim
    Lp = 128 * max(1, pl.cdiv(two_l, 128))
    wh = jnp.pad(wh, ((0, 0), (0, Lp - two_l)))
    bh = jnp.pad(bh, ((0, 0), (0, Lp - two_l)))

    return {
        "w1": w1.astype(jnp.bfloat16), "b1": b1,
        "w2": w2.astype(jnp.bfloat16), "b2": b2,
        "wh": wh.astype(jnp.bfloat16), "bh": bh,
        "latent_dim": latent_dim,
    }


if __name__ == "__main__":
    key = jax.random.PRNGKey(0)
    input_shape = (4, 16, 16)   # (C, H, W) -> 1024 flattened features
    latent_dim = 32
    B = 2

    key, kx = jax.random.split(key)
    x = jax.random.normal(kx, (B,) + input_shape, dtype=jnp.float32)

    params = init_params(key, input_shape, latent_dim)

    fwd = jax.jit(lambda xx: encoder_forward(xx, params))
    mean, logvar = fwd(x)
    jax.block_until_ready((mean, logvar))

    # Pure-JAX reference mirroring the kernel math (bf16 operands, f32 acc).
    bf = lambda a: a.astype(jnp.bfloat16).astype(jnp.float32)
    xf = bf(x.reshape(B, -1))
    w1f = params["w1"].astype(jnp.float32)
    w2f = params["w2"].astype(jnp.float32)
    whf = params["wh"].astype(jnp.float32)
    h1 = jnp.maximum(xf @ w1f + params["b1"], 0.0)
    h2 = jnp.maximum(bf(h1) @ w2f + params["b2"], 0.0)
    ref = bf(h2) @ whf + params["bh"]
    ref_mean = ref[:, :latent_dim]
    ref_logvar = ref[:, latent_dim:2 * latent_dim]

    assert mean.shape == (B, latent_dim) and logvar.shape == (B, latent_dim)
    assert jnp.allclose(mean, ref_mean, atol=1e-2, rtol=1e-2)
    assert jnp.allclose(logvar, ref_logvar, atol=1e-2, rtol=1e-2)

    print("KERNEL_OK")
</pallas_src>

<mosaic_0001>
module attributes {stable_mosaic.version = 11 : i64} {
  func.func @encoder_kernel(%arg0: i32, %arg1: memref<2x1024xbf16, #tpu.memory_space<vmem>>, %arg2: memref<1024x512xbf16, #tpu.memory_space<vmem>>, %arg3: memref<1x512xf32, #tpu.memory_space<vmem>>, %arg4: memref<512x256xbf16, #tpu.memory_space<vmem>>, %arg5: memref<1x256xf32, #tpu.memory_space<vmem>>, %arg6: memref<256x128xbf16, #tpu.memory_space<vmem>>, %arg7: memref<1x128xf32, #tpu.memory_space<vmem>>, %arg8: memref<2x128xf32, #tpu.memory_space<vmem>>) attributes {dimension_semantics = [#tpu.dimension_semantics<parallel>], iteration_bounds = array<i64: 1>, scalar_prefetch = 0 : i64, scratch_operands = 0 : i64, tpu.core_type = #tpu.core_type<tc>, window_params = [{transform_indices = @transform_0, window_bounds = array<i64: 2, 1024>}, {pipeline_mode = #tpu.pipeline_mode<synchronous>, transform_indices = @transform_1, window_bounds = array<i64: 1024, 512>}, {pipeline_mode = #tpu.pipeline_mode<synchronous>, transform_indices = @transform_2, window_bounds = array<i64: 1, 512>}, {pipeline_mode = #tpu.pipeline_mode<synchronous>, transform_indices = @transform_3, window_bounds = array<i64: 512, 256>}, {pipeline_mode = #tpu.pipeline_mode<synchronous>, transform_indices = @transform_4, window_bounds = array<i64: 1, 256>}, {pipeline_mode = #tpu.pipeline_mode<synchronous>, transform_indices = @transform_5, window_bounds = array<i64: 256, 128>}, {pipeline_mode = #tpu.pipeline_mode<synchronous>, transform_indices = @transform_6, window_bounds = array<i64: 1, 128>}, {transform_indices = @transform_7, window_bounds = array<i64: 2, 128>}]} {
    %c0 = arith.constant 0 : index
    %c0_0 = arith.constant 0 : index
    %0 = vector.load %arg1[%c0, %c0_0] : memref<2x1024xbf16, #tpu.memory_space<vmem>>, vector<2x1024xbf16>
    %c0_1 = arith.constant 0 : index
    %c0_2 = arith.constant 0 : index
    %1 = vector.load %arg2[%c0_1, %c0_2] : memref<1024x512xbf16, #tpu.memory_space<vmem>>, vector<1024x512xbf16>
    %cst = arith.constant dense<0.000000e+00> : vector<2x512xf32>
    %2 = tpu.matmul %0, %1, %cst {dimension_numbers = #tpu.dot_dimension_numbers<[1], [0], [0], [1], [0, 0, 1, 1], [], []>} : vector<2x1024xbf16>, vector<1024x512xbf16>, vector<2x512xf32> -> vector<2x512xf32>
    %c0_3 = arith.constant 0 : index
    %c0_4 = arith.constant 0 : index
    %3 = vector.load %arg3[%c0_3, %c0_4] : memref<1x512xf32, #tpu.memory_space<vmem>>, vector<1x512xf32>
    %4 = vector.broadcast %3 : vector<1x512xf32> to vector<2x512xf32>
    %5 = arith.addf %2, %4 : vector<2x512xf32>
    %cst_5 = arith.constant 0.000000e+00 : f32
    %6 = vector.broadcast %cst_5 : f32 to vector<2x512xf32>
    %7 = arith.maximumf %5, %6 : vector<2x512xf32>
    %8 = arith.truncf %7 : vector<2x512xf32> to vector<2x512xbf16>
    %c0_6 = arith.constant 0 : index
    %c0_7 = arith.constant 0 : index
    %9 = vector.load %arg4[%c0_6, %c0_7] : memref<512x256xbf16, #tpu.memory_space<vmem>>, vector<512x256xbf16>
    %cst_8 = arith.constant dense<0.000000e+00> : vector<2x256xf32>
    %10 = tpu.matmul %8, %9, %cst_8 {dimension_numbers = #tpu.dot_dimension_numbers<[1], [0], [0], [1], [0, 0, 1, 1], [], []>} : vector<2x512xbf16>, vector<512x256xbf16>, vector<2x256xf32> -> vector<2x256xf32>
    %c0_9 = arith.constant 0 : index
    %c0_10 = arith.constant 0 : index
    %11 = vector.load %arg5[%c0_9, %c0_10] : memref<1x256xf32, #tpu.memory_space<vmem>>, vector<1x256xf32>
    %12 = vector.broadcast %11 : vector<1x256xf32> to vector<2x256xf32>
    %13 = arith.addf %10, %12 : vector<2x256xf32>
    %cst_11 = arith.constant 0.000000e+00 : f32
    %14 = vector.broadcast %cst_11 : f32 to vector<2x256xf32>
    %15 = arith.maximumf %13, %14 : vector<2x256xf32>
    %16 = arith.truncf %15 : vector<2x256xf32> to vector<2x256xbf16>
    %c0_12 = arith.constant 0 : index
    %c0_13 = arith.constant 0 : index
    %17 = vector.load %arg6[%c0_12, %c0_13] : memref<256x128xbf16, #tpu.memory_space<vmem>>, vector<256x128xbf16>
    %cst_14 = arith.constant dense<0.000000e+00> : vector<2x128xf32>
    %18 = tpu.matmul %16, %17, %cst_14 {dimension_numbers = #tpu.dot_dimension_numbers<[1], [0], [0], [1], [0, 0, 1, 1], [], []>} : vector<2x256xbf16>, vector<256x128xbf16>, vector<2x128xf32> -> vector<2x128xf32>
    %c0_15 = arith.constant 0 : index
    %c0_16 = arith.constant 0 : index
    %19 = vector.load %arg7[%c0_15, %c0_16] : memref<1x128xf32, #tpu.memory_space<vmem>>, vector<1x128xf32>
    %20 = vector.broadcast %19 : vector<1x128xf32> to vector<2x128xf32>
    %21 = arith.addf %18, %20 : vector<2x128xf32>
    %c0_17 = arith.constant 0 : index
    %c0_18 = arith.constant 0 : index
    %22 = vector.load %arg8[%c0_17, %c0_18] : memref<2x128xf32, #tpu.memory_space<vmem>>, vector<2x128xf32>
    tpu.vector_store %arg8[%c0_17, %c0_18], %21 {strides = array<i32>} : memref<2x128xf32, #tpu.memory_space<vmem>>, vector<2x128xf32>,
    return
  }
  func.func @transform_0(%arg0: i32) -> (i32, i32) {
    %c0_i32 = arith.constant 0 : i32
    %c0_i32_0 = arith.constant 0 : i32
    return %arg0, %c0_i32 : i32, i32
  }
  func.func @transform_1(%arg0: i32) -> (i32, i32) {
    %c0_i32 = arith.constant 0 : i32
    %c0_i32_0 = arith.constant 0 : i32
    %c0_i32_1 = arith.constant 0 : i32
    return %c0_i32, %c0_i32_0 : i32, i32
  }
  func.func @transform_2(%arg0: i32) -> (i32, i32) {
    %c0_i32 = arith.constant 0 : i32
    %c0_i32_0 = arith.constant 0 : i32
    %c0_i32_1 = arith.constant 0 : i32
    return %c0_i32, %c0_i32_0 : i32, i32
  }
  func.func @transform_3(%arg0: i32) -> (i32, i32) {
    %c0_i32 = arith.constant 0 : i32
    %c0_i32_0 = arith.constant 0 : i32
    %c0_i32_1 = arith.constant 0 : i32
    return %c0_i32, %c0_i32_0 : i32, i32
  }
  func.func @transform_4(%arg0: i32) -> (i32, i32) {
    %c0_i32 = arith.constant 0 : i32
    %c0_i32_0 = arith.constant 0 : i32
    %c0_i32_1 = arith.constant 0 : i32
    return %c0_i32, %c0_i32_0 : i32, i32
  }
  func.func @transform_5(%arg0: i32) -> (i32, i32) {
    %c0_i32 = arith.constant 0 : i32
    %c0_i32_0 = arith.constant 0 : i32
    %c0_i32_1 = arith.constant 0 : i32
    return %c0_i32, %c0_i32_0 : i32, i32
  }
  func.func @transform_6(%arg0: i32) -> (i32, i32) {
    %c0_i32 = arith.constant 0 : i32
    %c0_i32_0 = arith.constant 0 : i32
    %c0_i32_1 = arith.constant 0 : i32
    return %c0_i32, %c0_i32_0 : i32, i32
  }
  func.func @transform_7(%arg0: i32) -> (i32, i32) {
    %c0_i32 = arith.constant 0 : i32
    %c0_i32_0 = arith.constant 0 : i32
    return %arg0, %c0_i32 : i32, i32
  }
}

</mosaic_0001>

<bundles_post_ra>
// kernel: _lambda_.1
= control target key start
LH: loop header
LB: loop body
LE: loop exit
PB: predicated region body
PF: predicated region fallthrough
CT: control target
= control target key end

     0   :  { %12 = vsyncpa [#allocation3], 0  ;;  %s3768_s0 = inlined_call_operand.vmem [shape: bf16[2,1024], index: 0, kind: input, shape index: {}]   ;;  %s3769_s1 = inlined_call_operand.hbm [shape: bf16[1024,512], index: 1, kind: input, shape index: {}]   ;;  %s3770_s2 = inlined_call_operand.vmem [shape: f32[1,512], index: 2, kind: input, shape index: {}]   ;;  %s3771_s3 = inlined_call_operand.hbm [shape: bf16[512,256], index: 3, kind: input, shape index: {}]   ;;  %s3772_s4 = inlined_call_operand.vmem [shape: f32[1,256], index: 4, kind: input, shape index: {}]   ;;  %s3773_s5 = inlined_call_operand.vmem [shape: bf16[256,128], index: 5, kind: input, shape index: {}]   ;;  %s3774_s6 = inlined_call_operand.vmem [shape: f32[1,128], index: 6, kind: input, shape index: {}]   ;;  %s3775_s7 = inlined_call_operand.vmem [shape: f32[2,128], index: 7, kind: output, shape index: {}]  }
   0x1   :  { %13 = vsyncpa [#allocation5], 0  ;;  %s3579_s24 = smov [#allocation2]  }
   0x2   :  { %s21_s25 = sshll.u32 %s3579_s24, 4  ;;  %s22_s25 = int_to_ptr.vmem [resolvable:$true] %s21_s25 }
   0x3   :  { %s3543_s26 = scalar_lea.vmem %s22_s25, 32768  ;;  %p3548_p1 = scmp.lt.s32.totalorder %s22_s25, %s22_s25 }
   0x4   :  { %p3544_p0 = scmp.ne.s32.totalorder %s22_s25, %s3543_s26  ;;  %p3549_p2 = scmp.lt.s32.totalorder %s3543_s26, %s3543_s26 }
   0x6   :  { %p3550_p3 = por %p3549_p2, %p3548_p1 }
   0x8   :  { %p3551_p4 = pnand %p3550_p3, %p3544_p0 }
   0xa   :  { %3554 = shalt.err (!%p3551_p4)
}
   0xb   :  { %s3580_s27 = smov 256   ;;  %s3581_s28 = smov 16  }
   0xc   :  { %27 = dma.hbm_to_vmem [thread:$0]  %s3769_s1, 32768, %s22_s25, [#allocation3], %s3580_s27, %s3580_s27, %s3581_s28  }
   0xd   :  { %s3582_s8 = smov [#allocation4]  }
   0xe   :  { %s35_s9 = sshll.u32 %s3582_s8, 4  ;;  %s36_s9 = int_to_ptr.vmem [resolvable:$true] %s35_s9 }
   0xf   :  { %s3563_s10 = scalar_lea.vmem %s36_s9, 8192  ;;  %p3568_p6 = scmp.lt.s32.totalorder %s36_s9, %s36_s9 }
  0x10   :  { %p3564_p5 = scmp.ne.s32.totalorder %s36_s9, %s3563_s10  ;;  %p3569_p7 = scmp.lt.s32.totalorder %s3563_s10, %s3563_s10 }
  0x12   :  { %p3570_p8 = por %p3569_p7, %p3568_p6 }
  0x14   :  { %p3571_p9 = pnand %p3570_p8, %p3564_p5 }
  0x16   :  { %3574 = shalt.err (!%p3571_p9)
}
  0x17   :  { %s3583_s11 = smov 128   ;;  %s3584_s12 = smov 8  }
  0x18   :  { %41 = dma.hbm_to_vmem [thread:$0]  %s3771_s3, 8192, %s36_s9, [#allocation5], %s3583_s11, %s3583_s11, %s3584_s12  }
  0x19   :  { %3575 = dma.done.wait [#allocation3], 32768  }
  0x1a   :  { %3576 = vsyncadd [#allocation3], 4294934528 }
  0x1b   :  { %3577 = dma.done.wait [#allocation5], 8192  }
  0x1c   :  { %3578 = vsyncadd [#allocation5], 4294959104  ;;  %v3038_v0 = vld [vmem:[#allocation2 + $0xe4] ss:$16 sps:$4 sm:$0xff]   ;;  %v3042_v2 = vld [vmem:[#allocation2 + $0xe0] ss:$16 sps:$4 sm:$0xff]   ;;  %v314_v36 = vlaneseq }
  0x1d   :  { %v3040_v1 = vld [vmem:[#allocation2 + $0x2e4] ss:$16 sps:$4 sm:$0xff]   ;;  %1672 = vmatprep.subr.bf16.mxu0 %v3038_v0  ;;  %v3043_v3 = vld [vmem:[#allocation2 + $0x2e0] ss:$16 sps:$4 sm:$0xff]   ;;  %v3585_v37 = vmov 1966171168  }
  0x1e   :  { %1713 = vmatprep.subr.bf16.mxu1 %v3040_v1  ;;  %v3044_v4 = vld [vmem:[#allocation2 + $0xc4] ss:$16 sps:$4 sm:$0xff]   ;;  %1673 = vmatpush1.bf16.msra.mxu0 %v3042_v2  ;;  %v3048_v6 = vld [vmem:[#allocation2 + $0xc0] ss:$16 sps:$4 sm:$0xff]   ;;  %v337_v38 = vunpack.c.l.s4 %v3585_v37  ;;  %v3632_v42 = vshrl.u32 %v314_v36, 7 }
  0x1f   :  { %1714 = vmatpush1.bf16.msra.mxu1 %v3043_v3  ;;  %v3046_v5 = vld [vmem:[#allocation2 + $0x2c4] ss:$16 sps:$4 sm:$0xff]   ;;  %1674 = vmatprep.subr.bf16.mxu0 %v3044_v4  ;;  %v3049_v7 = vld [vmem:[#allocation2 + $0x2c0] ss:$16 sps:$4 sm:$0xff]  }
  0x20   :  { %1715 = vmatprep.subr.bf16.mxu1 %v3046_v5  ;;  %v3050_v8 = vld [vmem:[#allocation2 + $0xa4] ss:$16 sps:$4 sm:$0xff]   ;;  %v3054_v10 = vld [vmem:[#allocation2 + $0xa0] ss:$16 sps:$4 sm:$0xff]   ;;  %v338_v43 = vunpack.c.0.s8 %v337_v38 }
  0x21   :  { %v3052_v9 = vld [vmem:[#allocation2 + $0x2a4] ss:$16 sps:$4 sm:$0xff]   ;;  %v3055_v11 = vld [vmem:[#allocation2 + $0x2a0] ss:$16 sps:$4 sm:$0xff]  }
  0x22   :  { %1675 = vmatpush1.bf16.msra.mxu0 %v3048_v6  ;;  %v3056_v12 = vld [vmem:[#allocation2 + $0x84] ss:$16 sps:$4 sm:$0xff]   ;;  %v3060_v14 = vld [vmem:[#allocation2 + $0x80] ss:$16 sps:$4 sm:$0xff]   ;;  %v341_v49 = vsub.s32 %v338_v43, %v3632_v42 }
  0x23   :  { %1716 = vmatpush1.bf16.msra.mxu1 %v3049_v7  ;;  %1676 = vmatprep.subr.bf16.mxu0 %v3050_v8  ;;  %v3058_v13 = vld [vmem:[#allocation2 + $0x284] ss:$16 sps:$4 sm:$0xff]   ;;  %v3061_v15 = vld [vmem:[#allocation2 + $0x280] ss:$16 sps:$4 sm:$0xff]  }
  0x24   :  { %1717 = vmatprep.subr.bf16.mxu1 %v3052_v9  ;;  %v3062_v16 = vld [vmem:[#allocation2 + $0x64] ss:$16 sps:$4 sm:$0xff]   ;;  %v3066_v18 = vld [vmem:[#allocation2 + $0x60] ss:$16 sps:$4 sm:$0xff]  }
  0x25   :  { %v3064_v17 = vld [vmem:[#allocation2 + $0x264] ss:$16 sps:$4 sm:$0xff]   ;;  %v3067_v19 = vld [vmem:[#allocation2 + $0x260] ss:$16 sps:$4 sm:$0xff]  }
  0x26   :  { %1677 = vmatpush1.bf16.msra.mxu0 %v3054_v10  ;;  %v3068_v20 = vld [vmem:[#allocation2 + $0x44] ss:$16 sps:$4 sm:$0xff]   ;;  %v3072_v22 = vld [vmem:[#allocation2 + $0x40] ss:$16 sps:$4 sm:$0xff]  }
  0x27   :  { %1718 = vmatpush1.bf16.msra.mxu1 %v3055_v11  ;;  %1678 = vmatprep.subr.bf16.mxu0 %v3056_v12  ;;  %v3070_v21 = vld [vmem:[#allocation2 + $0x244] ss:$16 sps:$4 sm:$0xff]   ;;  %v3073_v23 = vld [vmem:[#allocation2 + $0x240] ss:$16 sps:$4 sm:$0xff]  }
  0x28   :  { %1719 = vmatprep.subr.bf16.mxu1 %v3058_v13  ;;  %v3074_v24 = vld [vmem:[#allocation2 + $0x24] ss:$16 sps:$4 sm:$0xff]   ;;  %v3078_v26 = vld [vmem:[#allocation2 + $0x20] ss:$16 sps:$4 sm:$0xff]  }
  0x29   :  { %v3076_v25 = vld [vmem:[#allocation2 + $0x224] ss:$16 sps:$4 sm:$0xff]   ;;  %v3079_v27 = vld [vmem:[#allocation2 + $0x220] ss:$16 sps:$4 sm:$0xff]  }
  0x2a   :  { %1679 = vmatpush1.bf16.msra.mxu0 %v3060_v14  ;;  %v3080_v28 = vld [vmem:[#allocation2 + $0x4] ss:$16 sps:$4 sm:$0xff]   ;;  %v3084_v30 = vld [vmem:[#allocation2] ss:$16 sps:$4 sm:$0xff]  }
  0x2b   :  { %1720 = vmatpush1.bf16.msra.mxu1 %v3061_v15  ;;  %1680 = vmatprep.subr.bf16.mxu0 %v3062_v16  ;;  %v3082_v29 = vld [vmem:[#allocation2 + $0x204] ss:$16 sps:$4 sm:$0xff]   ;;  %v3085_v31 = vld [vmem:[#allocation2 + $0x200] ss:$16 sps:$4 sm:$0xff]  }
  0x2c   :  { %1721 = vmatprep.subr.bf16.mxu1 %v3064_v17  ;;  %v3086_v32 = vld [vmem:[#allocation2 + $0x1e4] ss:$16 sps:$4 sm:$0xff]   ;;  %v3090_v34 = vld [vmem:[#allocation2 + $0x1e0] ss:$16 sps:$4 sm:$0xff]  }
  0x2d   :  { %v3088_v33 = vld [vmem:[#allocation2 + $0x3e4] ss:$16 sps:$4 sm:$0xff]   ;;  %v3091_v35 = vld [vmem:[#allocation2 + $0x3e0] ss:$16 sps:$4 sm:$0xff]  }
  0x2e   :  { %1681 = vmatpush1.bf16.msra.mxu0 %v3066_v18  ;;  %v3092_v39 = vld [vmem:[#allocation2 + $0x1c4] ss:$16 sps:$4 sm:$0xff]   ;;  %v3096_v41 = vld [vmem:[#allocation2 + $0x1c0] ss:$16 sps:$4 sm:$0xff]  }
  0x2f   :  { %1722 = vmatpush1.bf16.msra.mxu1 %v3067_v19  ;;  %1682 = vmatprep.subr.bf16.mxu0 %v3068_v20  ;;  %v3094_v40 = vld [vmem:[#allocation2 + $0x3c4] ss:$16 sps:$4 sm:$0xff]   ;;  %v3097_v44 = vld [vmem:[#allocation2 + $0x3c0] ss:$16 sps:$4 sm:$0xff]  }
  0x30   :  { %1723 = vmatprep.subr.bf16.mxu1 %v3070_v21  ;;  %v3098_v45 = vld [vmem:[#allocation2 + $0x1a4] ss:$16 sps:$4 sm:$0xff]   ;;  %v3102_v47 = vld [vmem:[#allocation2 + $0x1a0] ss:$16 sps:$4 sm:$0xff]  }
  0x31   :  { %v3100_v46 = vld [vmem:[#allocation2 + $0x3a4] ss:$16 sps:$4 sm:$0xff]   ;;  %v3103_v48 = vld [vmem:[#allocation2 + $0x3a0] ss:$16 sps:$4 sm:$0xff]  }
  0x32   :  { %1683 = vmatpush1.bf16.msra.mxu0 %v3072_v22  ;;  %v3104_v50 = vld [vmem:[#allocation2 + $0x184] ss:$16 sps:$4 sm:$0xff]   ;;  %v3108_v53 = vld [vmem:[#allocation2 + $0x180] ss:$16 sps:$4 sm:$0xff]  }
  0x33   :  { %1724 = vmatpush1.bf16.msra.mxu1 %v3073_v23  ;;  %1684 = vmatprep.subr.bf16.mxu0 %v3074_v24  ;;  %v3106_v51 = vld [vmem:[#allocation2 + $0x384] ss:$16 sps:$4 sm:$0xff]   ;;  %v3109_v56 = vld [vmem:[#allocation2 + $0x380] ss:$16 sps:$4 sm:$0xff]  }
  0x34   :  { %1725 = vmatprep.subr.bf16.mxu1 %v3076_v25  ;;  %v55_v52 = vld [vmem:[%s3768_s0] sm:$0xff] }
  0x35   :  { %v342_v54 = vrot.slane %v55_v52, %v341_v49  ;;  %v335_v55 = vcombine.high %v55_v52, %v55_v52  ;;  %v3110_v57 = vld [vmem:[#allocation2 + $0x164] ss:$16 sps:$4 sm:$0xff]   ;;  %v3114_v61 = vld [vmem:[#allocation2 + $0x160] ss:$16 sps:$4 sm:$0xff]  }
  0x36   :  { %1685 = vmatpush1.bf16.msra.mxu0 %v3078_v26  ;;  %v3112_v58 = vld [vmem:[#allocation2 + $0x364] ss:$16 sps:$4 sm:$0xff]   ;;  %v3115_v0 = vld [vmem:[#allocation2 + $0x360] ss:$16 sps:$4 sm:$0xff]  }
  0x37   :  { %1726 = vmatpush1.bf16.msra.mxu1 %v3079_v27  ;;  %1686 = vmatprep.subr.bf16.mxu0 %v3080_v28  ;;  %v350_v59 = vcombine.high %v342_v54, %v342_v54  ;;  %v349_v60 = vrot.slane %v335_v55, %v341_v49  ;;  %v3116_v1 = vld [vmem:[#allocation2 + $0x144] ss:$16 sps:$4 sm:$0xff]   ;;  %v3120_v4 = vld [vmem:[#allocation2 + $0x140] ss:$16 sps:$4 sm:$0xff]   ;;  %v3648_v14 = vrot.slane %v342_v54, %v341_v49 }
  0x38   :  { %1727 = vmatprep.subr.bf16.mxu1 %v3082_v29  ;;  %v3118_v2 = vld [vmem:[#allocation2 + $0x344] ss:$16 sps:$4 sm:$0xff]   ;;  %v3121_v5 = vld [vmem:[#allocation2 + $0x340] ss:$16 sps:$4 sm:$0xff]  }
  0x39   :  { %v3638_v62 = vrot.slane %v350_v59, %v341_v49  ;;  %v3640_v63 = vrot.slane %v349_v60, %v341_v49  ;;  %v3122_v6 = vld [vmem:[#allocation2 + $0x124] ss:$16 sps:$4 sm:$0xff]   ;;  %v3126_v8 = vld [vmem:[#allocation2 + $0x120] ss:$16 sps:$4 sm:$0xff]   ;;  %v351_v12 = vcombine.high %v349_v60, %v349_v60  ;;  %v3654_v19 = vcombine.high %v3648_v14, %v3648_v14 }
  0x3a   :  { %1687 = vmatpush1.bf16.msra.mxu0 %v3084_v30  ;;  %v3124_v7 = vld [vmem:[#allocation2 + $0x324] ss:$16 sps:$4 sm:$0xff]   ;;  %v3127_v9 = vld [vmem:[#allocation2 + $0x320] ss:$16 sps:$4 sm:$0xff]  }
  0x3b   :  { %1728 = vmatpush1.bf16.msra.mxu1 %v3085_v31  ;;  %1688 = vmatprep.subr.bf16.mxu0 %v3086_v32  ;;  %v3644_v3 = vcombine.high %v3638_v62, %v3638_v62  ;;  %v3128_v10 = vld [vmem:[#allocation2 + $0x104] ss:$16 sps:$4 sm:$0xff]   ;;  %v3132_v13 = vld [vmem:[#allocation2 + $0x100] ss:$16 sps:$4 sm:$0xff]   ;;  %v3650_v18 = vrot.slane %v351_v12, %v341_v49 }
  0x3c   :  { %1729 = vmatprep.subr.bf16.mxu1 %v3088_v33  ;;  %1704 = vmatprep.mubr.bf16.mxu0 %v3638_v62  ;;  %v3130_v11 = vld [vmem:[#allocation2 + $0x304] ss:$16 sps:$4 sm:$0xff]   ;;  %v3133_v15 = vld [vmem:[#allocation2 + $0x300] ss:$16 sps:$4 sm:$0xff]  }
  0x3d   :  { %1745 = vmatprep.mubr.bf16.mxu1 %v3644_v3  ;;  %v3136_v16 = vld [vmem:[#allocation2 + $0x4e4] ss:$16 sps:$4 sm:$0xff]   ;;  %v3134_v20 = vld [vmem:[#allocation2 + $0x4e0] ss:$16 sps:$4 sm:$0xff]   ;;  %v3658_v24 = vcombine.high %v3650_v18, %v3650_v18 }
  0x3e   :  { %1689 = vmatpush2.bf16.msra.mxu0 %v3090_v34  ;;  %v3139_v17 = vld [vmem:[#allocation2 + $0x6e4] ss:$16 sps:$4 sm:$0xff]   ;;  %v3137_v21 = vld [vmem:[#allocation2 + $0x6e0] ss:$16 sps:$4 sm:$0xff]  }
  0x3f   :  { %1730 = vmatpush2.bf16.msra.mxu1 %v3091_v35  ;;  %1690 = vmatprep.subr.bf16.mxu0 %v3092_v39  ;;  %v3142_v22 = vld [vmem:[#allocation2 + $0x4c4] ss:$16 sps:$4 sm:$0xff]   ;;  %v3140_v25 = vld [vmem:[#allocation2 + $0x4c0] ss:$16 sps:$4 sm:$0xff]  }
  0x40   :  { %1731 = vmatprep.subr.bf16.mxu1 %v3094_v40  ;;  %v3145_v23 = vld [vmem:[#allocation2 + $0x6c4] ss:$16 sps:$4 sm:$0xff]   ;;  %v3143_v26 = vld [vmem:[#allocation2 + $0x6c0] ss:$16 sps:$4 sm:$0xff]  }
  0x41   :  { %v3148_v27 = vld [vmem:[#allocation2 + $0x4a4] ss:$16 sps:$4 sm:$0xff]   ;;  %v3146_v29 = vld [vmem:[#allocation2 + $0x4a0] ss:$16 sps:$4 sm:$0xff]  }
  0x42   :  { %1691 = vmatpush2.bf16.msra.mxu0 %v3096_v41  ;;  %v3151_v28 = vld [vmem:[#allocation2 + $0x6a4] ss:$16 sps:$4 sm:$0xff]   ;;  %v3149_v30 = vld [vmem:[#allocation2 + $0x6a0] ss:$16 sps:$4 sm:$0xff]  }
  0x43   :  { %1732 = vmatpush2.bf16.msra.mxu1 %v3097_v44  ;;  %1692 = vmatprep.subr.bf16.mxu0 %v3098_v45  ;;  %v3154_v31 = vld [vmem:[#allocation2 + $0x484] ss:$16 sps:$4 sm:$0xff]   ;;  %v3152_v33 = vld [vmem:[#allocation2 + $0x480] ss:$16 sps:$4 sm:$0xff]  }
  0x44   :  { %1733 = vmatprep.subr.bf16.mxu1 %v3100_v46  ;;  %v3157_v32 = vld [vmem:[#allocation2 + $0x684] ss:$16 sps:$4 sm:$0xff]   ;;  %v3155_v34 = vld [vmem:[#allocation2 + $0x680] ss:$16 sps:$4 sm:$0xff]  }
  0x45   :  { %v3160_v35 = vld [vmem:[#allocation2 + $0x464] ss:$16 sps:$4 sm:$0xff]   ;;  %v3158_v37 = vld [vmem:[#allocation2 + $0x460] ss:$16 sps:$4 sm:$0xff]  }
  0x46   :  { %1693 = vmatpush2.bf16.msra.mxu0 %v3102_v47  ;;  %v3163_v36 = vld [vmem:[#allocation2 + $0x664] ss:$16 sps:$4 sm:$0xff]   ;;  %v3161_v38 = vld [vmem:[#allocation2 + $0x660] ss:$16 sps:$4 sm:$0xff]  }
  0x47   :  { %1734 = vmatpush2.bf16.msra.mxu1 %v3103_v48  ;;  %1694 = vmatprep.subr.bf16.mxu0 %v3104_v50  ;;  %v3166_v39 = vld [vmem:[#allocation2 + $0x444] ss:$16 sps:$4 sm:$0xff]   ;;  %v3164_v41 = vld [vmem:[#allocation2 + $0x440] ss:$16 sps:$4 sm:$0xff]  }
  0x48   :  { %1735 = vmatprep.subr.bf16.mxu1 %v3106_v51  ;;  %v3169_v40 = vld [vmem:[#allocation2 + $0x644] ss:$16 sps:$4 sm:$0xff]   ;;  %v3167_v43 = vld [vmem:[#allocation2 + $0x640] ss:$16 sps:$4 sm:$0xff]  }
  0x49   :  { %v3172_v44 = vld [vmem:[#allocation2 + $0x424] ss:$16 sps:$4 sm:$0xff]   ;;  %v3170_v46 = vld [vmem:[#allocation2 + $0x420] ss:$16 sps:$4 sm:$0xff]  }
  0x4a   :  { %1695 = vmatpush2.bf16.msra.mxu0 %v3108_v53  ;;  %v3175_v45 = vld [vmem:[#allocation2 + $0x624] ss:$16 sps:$4 sm:$0xff]   ;;  %v3173_v47 = vld [vmem:[#allocation2 + $0x620] ss:$16 sps:$4 sm:$0xff]  }
  0x4b   :  { %1736 = vmatpush2.bf16.msra.mxu1 %v3109_v56  ;;  %1696 = vmatprep.subr.bf16.mxu0 %v3110_v57  ;;  %v3178_v48 = vld [vmem:[#allocation2 + $0x404] ss:$16 sps:$4 sm:$0xff]   ;;  %v3176_v50 = vld [vmem:[#allocation2 + $0x400] ss:$16 sps:$4 sm:$0xff]  }
  0x4c   :  { %1737 = vmatprep.subr.bf16.mxu1 %v3112_v58  ;;  %v3181_v49 = vld [vmem:[#allocation2 + $0x604] ss:$16 sps:$4 sm:$0xff]   ;;  %v3179_v51 = vld [vmem:[#allocation2 + $0x600] ss:$16 sps:$4 sm:$0xff]  }
  0x4d   :  { %v3184_v52 = vld [vmem:[#allocation2 + $0x5e4] ss:$16 sps:$4 sm:$0xff]   ;;  %v3182_v54 = vld [vmem:[#allocation2 + $0x5e0] ss:$16 sps:$4 sm:$0xff]  }
  0x4e   :  { %1697 = vmatpush2.bf16.msra.mxu0 %v3114_v61  ;;  %v3187_v53 = vld [vmem:[#allocation2 + $0x7e4] ss:$16 sps:$4 sm:$0xff]   ;;  %v3185_v55 = vld [vmem:[#allocation2 + $0x7e0] ss:$16 sps:$4 sm:$0xff]  }
  0x4f   :  { %1738 = vmatpush2.bf16.msra.mxu1 %v3115_v0  ;;  %1698 = vmatprep.subr.bf16.mxu0 %v3116_v1  ;;  %v3190_v56 = vld [vmem:[#allocation2 + $0x5c4] ss:$16 sps:$4 sm:$0xff]   ;;  %v3188_v58 = vld [vmem:[#allocation2 + $0x5c0] ss:$16 sps:$4 sm:$0xff]  }
  0x50   :  { %1739 = vmatprep.subr.bf16.mxu1 %v3118_v2  ;;  %v3193_v57 = vld [vmem:[#allocation2 + $0x7c4] ss:$16 sps:$4 sm:$0xff]   ;;  %v3191_v59 = vld [vmem:[#allocation2 + $0x7c0] ss:$16 sps:$4 sm:$0xff]  }
  0x51   :  { %v3196_v60 = vld [vmem:[#allocation2 + $0x5a4] ss:$16 sps:$4 sm:$0xff]   ;;  %v3194_v0 = vld [vmem:[#allocation2 + $0x5a0] ss:$16 sps:$4 sm:$0xff]  }
  0x52   :  { %1699 = vmatpush2.bf16.msra.mxu0 %v3120_v4  ;;  %v3199_v61 = vld [vmem:[#allocation2 + $0x7a4] ss:$16 sps:$4 sm:$0xff]   ;;  %v3197_v1 = vld [vmem:[#allocation2 + $0x7a0] ss:$16 sps:$4 sm:$0xff]  }
  0x53   :  { %1740 = vmatpush2.bf16.msra.mxu1 %v3121_v5  ;;  %1700 = vmatprep.subr.bf16.mxu0 %v3122_v6  ;;  %v3202_v2 = vld [vmem:[#allocation2 + $0x584] ss:$16 sps:$4 sm:$0xff]   ;;  %v3200_v5 = vld [vmem:[#allocation2 + $0x580] ss:$16 sps:$4 sm:$0xff]  }
  0x54   :  { %1741 = vmatprep.subr.bf16.mxu1 %v3124_v7  ;;  %v3205_v4 = vld [vmem:[#allocation2 + $0x784] ss:$16 sps:$4 sm:$0xff]   ;;  %v3203_v6 = vld [vmem:[#allocation2 + $0x780] ss:$16 sps:$4 sm:$0xff]  }
  0x55   :  { %v3208_v7 = vld [vmem:[#allocation2 + $0x564] ss:$16 sps:$4 sm:$0xff]  }
  0x56   :  { %1701 = vmatpush2.bf16.msra.mxu0 %v3126_v8  ;;  %v3211_v8 = vld [vmem:[#allocation2 + $0x764] ss:$16 sps:$4 sm:$0xff]  }
  0x57   :  { %1742 = vmatpush2.bf16.msra.mxu1 %v3127_v9  ;;  %1702 = vmatprep.subr.bf16.mxu0 %v3128_v10  ;;  %v3206_v9 = vld [vmem:[#allocation2 + $0x560] ss:$16 sps:$4 sm:$0xff]   ;;  %v3217_v12 = vld [vmem:[#allocation2 + $0x744] ss:$16 sps:$4 sm:$0xff]  }
  0x58   :  { %1743 = vmatprep.subr.bf16.mxu1 %v3130_v11  ;;  %v3209_v10 = vld [vmem:[#allocation2 + $0x760] ss:$16 sps:$4 sm:$0xff]   ;;  %v3214_v11 = vld [vmem:[#allocation2 + $0x544] ss:$16 sps:$4 sm:$0xff]  }
  0x5a   :  { %1703 = vmatpush2.bf16.msra.mxu0 %v3132_v13  ;;  %v3212_v13 = vld [vmem:[#allocation2 + $0x540] ss:$16 sps:$4 sm:$0xff]  }
  0x5b   :  { %1744 = vmatpush2.bf16.msra.mxu1 %v3133_v15  ;;  %1754 = vmatprep.subr.bf16.mxu0 %v3136_v16  ;;  %v3215_v15 = vld [vmem:[#allocation2 + $0x740] ss:$16 sps:$4 sm:$0xff]   ;;  %v3220_v16 = vld [vmem:[#allocation2 + $0x524] ss:$16 sps:$4 sm:$0xff]  }
  0x5c   :  { %1795 = vmatprep.subr.bf16.mxu1 %v3139_v17  ;;  %v3223_v17 = vld [vmem:[#allocation2 + $0x724] ss:$16 sps:$4 sm:$0xff]  }
  0x5d   :  { %1705 = vmatmul.mubr.bf16.vlgmr.msra.gmra.mxu0 %v3648_v14 }
  0x5e   :  { %1746 = vmatmul.mubr.bf16.vlgmr.msra.gmra.mxu1 %v3654_v19  ;;  %1755 = vmatpush1.bf16.msra.mxu0 %v3134_v20  ;;  %v3218_v20 = vld [vmem:[#allocation2 + $0x520] ss:$16 sps:$4 sm:$0xff]  }
  0x5f   :  { %1796 = vmatpush1.bf16.msra.mxu1 %v3137_v21  ;;  %1756 = vmatprep.subr.bf16.mxu0 %v3142_v22  ;;  %v3221_v21 = vld [vmem:[#allocation2 + $0x720] ss:$16 sps:$4 sm:$0xff]   ;;  %v3226_v22 = vld [vmem:[#allocation2 + $0x504] ss:$16 sps:$4 sm:$0xff]  }
  0x60   :  { %1797 = vmatprep.subr.bf16.mxu1 %v3145_v23  ;;  %1786 = vmatprep.mubr.bf16.mxu0 %v3650_v18  ;;  %v3229_v23 = vld [vmem:[#allocation2 + $0x704] ss:$16 sps:$4 sm:$0xff]  }
  0x61   :  { %1827 = vmatprep.mubr.bf16.mxu1 %v3658_v24 }
  0x62   :  { %1757 = vmatpush1.bf16.msra.mxu0 %v3140_v25  ;;  %v3224_v25 = vld [vmem:[#allocation2 + $0x500] ss:$16 sps:$4 sm:$0xff]  }
  0x63   :  { %1798 = vmatpush1.bf16.msra.mxu1 %v3143_v26  ;;  %1758 = vmatprep.subr.bf16.mxu0 %v3148_v27  ;;  %v3227_v26 = vld [vmem:[#allocation2 + $0x700] ss:$16 sps:$4 sm:$0xff]   ;;  %v3233_v27 = vld [vmem:[#allocation2 + $0xec] ss:$16 sps:$4 sm:$0xff]  }
  0x64   :  { %1799 = vmatprep.subr.bf16.mxu1 %v3151_v28  ;;  %v3236_v28 = vld [vmem:[#allocation2 + $0x2ec] ss:$16 sps:$4 sm:$0xff]  }
  0x66   :  { %1759 = vmatpush1.bf16.msra.mxu0 %v3146_v29  ;;  %v3666_v29 = vcombine.high %v3640_v63, %v3640_v63 }
  0x67   :  { %1800 = vmatpush1.bf16.msra.mxu1 %v3149_v30  ;;  %1760 = vmatprep.subr.bf16.mxu0 %v3154_v31  ;;  %v3231_v30 = vld [vmem:[#allocation2 + $0xe8] ss:$16 sps:$4 sm:$0xff]  }
  0x68   :  { %1801 = vmatprep.subr.bf16.mxu1 %v3157_v32  ;;  %v3234_v31 = vld [vmem:[#allocation2 + $0x2e8] ss:$16 sps:$4 sm:$0xff]   ;;  %v3239_v32 = vld [vmem:[#allocation2 + $0xcc] ss:$16 sps:$4 sm:$0xff]  }
  0x6a   :  { %1761 = vmatpush1.bf16.msra.mxu0 %v3152_v33  ;;  %v3242_v33 = vld [vmem:[#allocation2 + $0x2cc] ss:$16 sps:$4 sm:$0xff]  }
  0x6b   :  { %1802 = vmatpush1.bf16.msra.mxu1 %v3155_v34  ;;  %1762 = vmatprep.subr.bf16.mxu0 %v3160_v35  ;;  %v3237_v34 = vld [vmem:[#allocation2 + $0xc8] ss:$16 sps:$4 sm:$0xff]  }
  0x6c   :  { %1803 = vmatprep.subr.bf16.mxu1 %v3163_v36  ;;  %v3240_v35 = vld [vmem:[#allocation2 + $0x2c8] ss:$16 sps:$4 sm:$0xff]   ;;  %v3245_v36 = vld [vmem:[#allocation2 + $0xac] ss:$16 sps:$4 sm:$0xff]  }
  0x6e   :  { %1763 = vmatpush1.bf16.msra.mxu0 %v3158_v37  ;;  %v3248_v37 = vld [vmem:[#allocation2 + $0x2ac] ss:$16 sps:$4 sm:$0xff]  }
  0x6f   :  { %1804 = vmatpush1.bf16.msra.mxu1 %v3161_v38  ;;  %1764 = vmatprep.subr.bf16.mxu0 %v3166_v39  ;;  %v3243_v38 = vld [vmem:[#allocation2 + $0xa8] ss:$16 sps:$4 sm:$0xff]  }
  0x70   :  { %1805 = vmatprep.subr.bf16.mxu1 %v3169_v40  ;;  %v3246_v39 = vld [vmem:[#allocation2 + $0x2a8] ss:$16 sps:$4 sm:$0xff]   ;;  %v3251_v40 = vld [vmem:[#allocation2 + $0x8c] ss:$16 sps:$4 sm:$0xff]  }
  0x72   :  { %1765 = vmatpush1.bf16.msra.mxu0 %v3164_v41  ;;  %v3254_v41 = vld [vmem:[#allocation2 + $0x28c] ss:$16 sps:$4 sm:$0xff]  }
  0x73   :  { %1806 = vmatpush1.bf16.msra.mxu1 %v3167_v43  ;;  %1766 = vmatprep.subr.bf16.mxu0 %v3172_v44  ;;  %v3249_v43 = vld [vmem:[#allocation2 + $0x88] ss:$16 sps:$4 sm:$0xff]  }
  0x74   :  { %1807 = vmatprep.subr.bf16.mxu1 %v3175_v45  ;;  %v3252_v44 = vld [vmem:[#allocation2 + $0x288] ss:$16 sps:$4 sm:$0xff]   ;;  %v3257_v45 = vld [vmem:[#allocation2 + $0x6c] ss:$16 sps:$4 sm:$0xff]  }
  0x76   :  { %1767 = vmatpush1.bf16.msra.mxu0 %v3170_v46  ;;  %v3260_v46 = vld [vmem:[#allocation2 + $0x26c] ss:$16 sps:$4 sm:$0xff]  }
  0x77   :  { %1808 = vmatpush1.bf16.msra.mxu1 %v3173_v47  ;;  %1768 = vmatprep.subr.bf16.mxu0 %v3178_v48  ;;  %v3255_v47 = vld [vmem:[#allocation2 + $0x68] ss:$16 sps:$4 sm:$0xff]   ;;  %v3266_v48 = vld [vmem:[#allocation2 + $0x24c] ss:$16 sps:$4 sm:$0xff]  }
  0x78   :  { %1809 = vmatprep.subr.bf16.mxu1 %v3181_v49  ;;  %v3261_v49 = vld [vmem:[#allocation2 + $0x48] ss:$16 sps:$4 sm:$0xff]  }
  0x7a   :  { %1769 = vmatpush1.bf16.msra.mxu0 %v3176_v50  ;;  %v3264_v50 = vld [vmem:[#allocation2 + $0x248] ss:$16 sps:$4 sm:$0xff]  }
  0x7b   :  { %1810 = vmatpush1.bf16.msra.mxu1 %v3179_v51  ;;  %1770 = vmatprep.subr.bf16.mxu0 %v3184_v52  ;;  %v3269_v51 = vld [vmem:[#allocation2 + $0x2c] ss:$16 sps:$4 sm:$0xff]  }
  0x7c   :  { %1811 = vmatprep.subr.bf16.mxu1 %v3187_v53  ;;  %v3272_v52 = vld [vmem:[#allocation2 + $0x22c] ss:$16 sps:$4 sm:$0xff]   ;;  %v3267_v53 = vld [vmem:[#allocation2 + $0x28] ss:$16 sps:$4 sm:$0xff]  }
  0x7e   :  { %1771 = vmatpush2.bf16.msra.mxu0 %v3182_v54  ;;  %v3270_v54 = vld [vmem:[#allocation2 + $0x228] ss:$16 sps:$4 sm:$0xff]  }
  0x7f   :  { %1812 = vmatpush2.bf16.msra.mxu1 %v3185_v55  ;;  %1772 = vmatprep.subr.bf16.mxu0 %v3190_v56  ;;  %v3275_v55 = vld [vmem:[#allocation2 + $0xc] ss:$16 sps:$4 sm:$0xff]  }
  0x80   :  { %1813 = vmatprep.subr.bf16.mxu1 %v3193_v57  ;;  %v3278_v56 = vld [vmem:[#allocation2 + $0x20c] ss:$16 sps:$4 sm:$0xff]   ;;  %v3273_v57 = vld [vmem:[#allocation2 + $0x8] ss:$16 sps:$4 sm:$0xff]  }
  0x82   :  { %1773 = vmatpush2.bf16.msra.mxu0 %v3188_v58  ;;  %v3276_v58 = vld [vmem:[#allocation2 + $0x208] ss:$16 sps:$4 sm:$0xff]  }
  0x83   :  { %1814 = vmatpush2.bf16.msra.mxu1 %v3191_v59  ;;  %1774 = vmatprep.subr.bf16.mxu0 %v3196_v60  ;;  %v3281_v59 = vld [vmem:[#allocation2 + $0x1ec] ss:$16 sps:$4 sm:$0xff]  }
  0x84   :  { %1815 = vmatprep.subr.bf16.mxu1 %v3199_v61  ;;  %v3284_v60 = vld [vmem:[#allocation2 + $0x3ec] ss:$16 sps:$4 sm:$0xff]   ;;  %v3279_v61 = vld [vmem:[#allocation2 + $0x1e8] ss:$16 sps:$4 sm:$0xff]  }
  0x86   :  { %1775 = vmatpush2.bf16.msra.mxu0 %v3194_v0  ;;  %v3282_v0 = vld [vmem:[#allocation2 + $0x3e8] ss:$16 sps:$4 sm:$0xff]  }
  0x87   :  { %1816 = vmatpush2.bf16.msra.mxu1 %v3197_v1  ;;  %1776 = vmatprep.subr.bf16.mxu0 %v3202_v2  ;;  %v3287_v1 = vld [vmem:[#allocation2 + $0x1cc] ss:$16 sps:$4 sm:$0xff]  }
  0x88   :  { %1817 = vmatprep.subr.bf16.mxu1 %v3205_v4  ;;  %v3290_v2 = vld [vmem:[#allocation2 + $0x3cc] ss:$16 sps:$4 sm:$0xff]   ;;  %v3285_v4 = vld [vmem:[#allocation2 + $0x1c8] ss:$16 sps:$4 sm:$0xff]  }
  0x8a   :  { %1777 = vmatpush2.bf16.msra.mxu0 %v3200_v5  ;;  %v3288_v5 = vld [vmem:[#allocation2 + $0x3c8] ss:$16 sps:$4 sm:$0xff]  }
  0x8b   :  { %1818 = vmatpush2.bf16.msra.mxu1 %v3203_v6  ;;  %1778 = vmatprep.subr.bf16.mxu0 %v3208_v7  ;;  %v3293_v6 = vld [vmem:[#allocation2 + $0x1ac] ss:$16 sps:$4 sm:$0xff]  }
  0x8c   :  { %1819 = vmatprep.subr.bf16.mxu1 %v3211_v8  ;;  %v3296_v7 = vld [vmem:[#allocation2 + $0x3ac] ss:$16 sps:$4 sm:$0xff]   ;;  %v3291_v8 = vld [vmem:[#allocation2 + $0x1a8] ss:$16 sps:$4 sm:$0xff]  }
  0x8e   :  { %1779 = vmatpush2.bf16.msra.mxu0 %v3206_v9  ;;  %v3294_v9 = vld [vmem:[#allocation2 + $0x3a8] ss:$16 sps:$4 sm:$0xff]  }
  0x8f   :  { %1820 = vmatpush2.bf16.msra.mxu1 %v3209_v10  ;;  %1780 = vmatprep.subr.bf16.mxu0 %v3214_v11  ;;  %v3299_v10 = vld [vmem:[#allocation2 + $0x18c] ss:$16 sps:$4 sm:$0xff]  }
  0x90   :  { %1821 = vmatprep.subr.bf16.mxu1 %v3217_v12  ;;  %v3302_v11 = vld [vmem:[#allocation2 + $0x38c] ss:$16 sps:$4 sm:$0xff]   ;;  %v3297_v12 = vld [vmem:[#allocation2 + $0x188] ss:$16 sps:$4 sm:$0xff]  }
  0x92   :  { %1781 = vmatpush2.bf16.msra.mxu0 %v3212_v13  ;;  %v3300_v13 = vld [vmem:[#allocation2 + $0x388] ss:$16 sps:$4 sm:$0xff]  }
  0x93   :  { %1822 = vmatpush2.bf16.msra.mxu1 %v3215_v15  ;;  %1782 = vmatprep.subr.bf16.mxu0 %v3220_v16  ;;  %v3305_v15 = vld [vmem:[#allocation2 + $0x16c] ss:$16 sps:$4 sm:$0xff]  }
  0x94   :  { %1823 = vmatprep.subr.bf16.mxu1 %v3223_v17  ;;  %v3308_v16 = vld [vmem:[#allocation2 + $0x36c] ss:$16 sps:$4 sm:$0xff]   ;;  %v3303_v17 = vld [vmem:[#allocation2 + $0x168] ss:$16 sps:$4 sm:$0xff]  }
  0x96   :  { %1783 = vmatpush2.bf16.msra.mxu0 %v3218_v20  ;;  %v3306_v20 = vld [vmem:[#allocation2 + $0x368] ss:$16 sps:$4 sm:$0xff]  }
  0x97   :  { %1824 = vmatpush2.bf16.msra.mxu1 %v3221_v21  ;;  %1784 = vmatprep.subr.bf16.mxu0 %v3226_v22  ;;  %v3311_v21 = vld [vmem:[#allocation2 + $0x14c] ss:$16 sps:$4 sm:$0xff]  }
  0x98   :  { %1825 = vmatprep.subr.bf16.mxu1 %v3229_v23  ;;  %v3314_v22 = vld [vmem:[#allocation2 + $0x34c] ss:$16 sps:$4 sm:$0xff]   ;;  %v3309_v23 = vld [vmem:[#allocation2 + $0x148] ss:$16 sps:$4 sm:$0xff]  }
  0x9a   :  { %1785 = vmatpush2.bf16.msra.mxu0 %v3224_v25  ;;  %v3312_v25 = vld [vmem:[#allocation2 + $0x348] ss:$16 sps:$4 sm:$0xff]  }
  0x9b   :  { %1826 = vmatpush2.bf16.msra.mxu1 %v3227_v26  ;;  %1836 = vmatprep.subr.bf16.mxu0 %v3233_v27  ;;  %v3317_v26 = vld [vmem:[#allocation2 + $0x12c] ss:$16 sps:$4 sm:$0xff]  }
  0x9c   :  { %1877 = vmatprep.subr.bf16.mxu1 %v3236_v28  ;;  %v3320_v27 = vld [vmem:[#allocation2 + $0x32c] ss:$16 sps:$4 sm:$0xff]   ;;  %v3315_v28 = vld [vmem:[#allocation2 + $0x128] ss:$16 sps:$4 sm:$0xff]  }
  0x9d   :  { %1787 = vmatmul.mubr.bf16.vlgmr.msra.gmra.mxu0 %v3640_v63 }
  0x9e   :  { %1828 = vmatmul.mubr.bf16.vlgmr.msra.gmra.mxu1 %v3666_v29  ;;  %1837 = vmatpush1.bf16.msra.mxu0 %v3231_v30  ;;  %v3318_v30 = vld [vmem:[#allocation2 + $0x328] ss:$16 sps:$4 sm:$0xff]  }
  0x9f   :  { %1878 = vmatpush1.bf16.msra.mxu1 %v3234_v31  ;;  %1838 = vmatprep.subr.bf16.mxu0 %v3239_v32  ;;  %v3323_v31 = vld [vmem:[#allocation2 + $0x10c] ss:$16 sps:$4 sm:$0xff]  }
  0xa0   :  { %1879 = vmatprep.subr.bf16.mxu1 %v3242_v33  ;;  %1868 = vmatprep.mubr.bf16.mxu0 %v3638_v62  ;;  %v3258_v62 = vld [vmem:[#allocation2 + $0x268] ss:$16 sps:$4 sm:$0xff]   ;;  %v3326_v32 = vld [vmem:[#allocation2 + $0x30c] ss:$16 sps:$4 sm:$0xff]  }
  0xa1   :  { %1909 = vmatprep.mubr.bf16.mxu1 %v3644_v3  ;;  %v3263_v3 = vld [vmem:[#allocation2 + $0x4c] ss:$16 sps:$4 sm:$0xff]   ;;  %v3321_v33 = vld [vmem:[#allocation2 + $0x108] ss:$16 sps:$4 sm:$0xff]  }
  0xa2   :  { %1839 = vmatpush1.bf16.msra.mxu0 %v3237_v34  ;;  %v3324_v34 = vld [vmem:[#allocation2 + $0x308] ss:$16 sps:$4 sm:$0xff]  }
  0xa3   :  { %1880 = vmatpush1.bf16.msra.mxu1 %v3240_v35  ;;  %1840 = vmatprep.subr.bf16.mxu0 %v3245_v36  ;;  %v3329_v35 = vld [vmem:[#allocation2 + $0x4ec] ss:$16 sps:$4 sm:$0xff]  }
  0xa4   :  { %1881 = vmatprep.subr.bf16.mxu1 %v3248_v37  ;;  %v3332_v36 = vld [vmem:[#allocation2 + $0x6ec] ss:$16 sps:$4 sm:$0xff]   ;;  %v3327_v37 = vld [vmem:[#allocation2 + $0x4e8] ss:$16 sps:$4 sm:$0xff]  }
  0xa6   :  { %1841 = vmatpush1.bf16.msra.mxu0 %v3243_v38  ;;  %v3330_v38 = vld [vmem:[#allocation2 + $0x6e8] ss:$16 sps:$4 sm:$0xff]  }
  0xa7   :  { %1882 = vmatpush1.bf16.msra.mxu1 %v3246_v39  ;;  %1842 = vmatprep.subr.bf16.mxu0 %v3251_v40  ;;  %v3335_v39 = vld [vmem:[#allocation2 + $0x4cc] ss:$16 sps:$4 sm:$0xff]  }
  0xa8   :  { %1883 = vmatprep.subr.bf16.mxu1 %v3254_v41  ;;  %v3338_v40 = vld [vmem:[#allocation2 + $0x6cc] ss:$16 sps:$4 sm:$0xff]   ;;  %v3333_v41 = vld [vmem:[#allocation2 + $0x4c8] ss:$16 sps:$4 sm:$0xff]  }
  0xaa   :  { %1843 = vmatpush1.bf16.msra.mxu0 %v3249_v43  ;;  %v3336_v43 = vld [vmem:[#allocation2 + $0x6c8] ss:$16 sps:$4 sm:$0xff]  }
  0xab   :  { %1884 = vmatpush1.bf16.msra.mxu1 %v3252_v44  ;;  %1844 = vmatprep.subr.bf16.mxu0 %v3257_v45  ;;  %v3341_v44 = vld [vmem:[#allocation2 + $0x4ac] ss:$16 sps:$4 sm:$0xff]  }
  0xac   :  { %1885 = vmatprep.subr.bf16.mxu1 %v3260_v46  ;;  %v3344_v45 = vld [vmem:[#allocation2 + $0x6ac] ss:$16 sps:$4 sm:$0xff]   ;;  %v3339_v46 = vld [vmem:[#allocation2 + $0x4a8] ss:$16 sps:$4 sm:$0xff]  }
  0xae   :  { %1845 = vmatpush1.bf16.msra.mxu0 %v3255_v47  ;;  %v3342_v47 = vld [vmem:[#allocation2 + $0x6a8] ss:$16 sps:$4 sm:$0xff]  }
  0xaf   :  { %1886 = vmatpush1.bf16.msra.mxu1 %v3258_v62  ;;  %1846 = vmatprep.subr.bf16.mxu0 %v3263_v3  ;;  %v3347_v62 = vld [vmem:[#allocation2 + $0x48c] ss:$16 sps:$4 sm:$0xff]   ;;  %v3345_v3 = vld [vmem:[#allocation2 + $0x488] ss:$16 sps:$4 sm:$0xff]  }
  0xb0   :  { %1887 = vmatprep.subr.bf16.mxu1 %v3266_v48  ;;  %v3353_v48 = vld [vmem:[#allocation2 + $0x46c] ss:$16 sps:$4 sm:$0xff]  }
  0xb2   :  { %1847 = vmatpush1.bf16.msra.mxu0 %v3261_v49  ;;  %v3356_v49 = vld [vmem:[#allocation2 + $0x66c] ss:$16 sps:$4 sm:$0xff]  }
  0xb3   :  { %1888 = vmatpush1.bf16.msra.mxu1 %v3264_v50  ;;  %1848 = vmatprep.subr.bf16.mxu0 %v3269_v51  ;;  %v3351_v50 = vld [vmem:[#allocation2 + $0x468] ss:$16 sps:$4 sm:$0xff]  }
  0xb4   :  { %1889 = vmatprep.subr.bf16.mxu1 %v3272_v52  ;;  %v3354_v51 = vld [vmem:[#allocation2 + $0x668] ss:$16 sps:$4 sm:$0xff]   ;;  %v3359_v52 = vld [vmem:[#allocation2 + $0x44c] ss:$16 sps:$4 sm:$0xff]  }
  0xb6   :  { %1849 = vmatpush1.bf16.msra.mxu0 %v3267_v53  ;;  %v3360_v53 = vld [vmem:[#allocation2 + $0x648] ss:$16 sps:$4 sm:$0xff]  }
  0xb7   :  { %1890 = vmatpush1.bf16.msra.mxu1 %v3270_v54  ;;  %1850 = vmatprep.subr.bf16.mxu0 %v3275_v55  ;;  %v3365_v54 = vld [vmem:[#allocation2 + $0x42c] ss:$16 sps:$4 sm:$0xff]  }
  0xb8   :  { %1891 = vmatprep.subr.bf16.mxu1 %v3278_v56  ;;  %v3368_v55 = vld [vmem:[#allocation2 + $0x62c] ss:$16 sps:$4 sm:$0xff]   ;;  %v3363_v56 = vld [vmem:[#allocation2 + $0x428] ss:$16 sps:$4 sm:$0xff]  }
  0xba   :  { %1851 = vmatpush1.bf16.msra.mxu0 %v3273_v57  ;;  %v3366_v57 = vld [vmem:[#allocation2 + $0x628] ss:$16 sps:$4 sm:$0xff]  }
  0xbb   :  { %1892 = vmatpush1.bf16.msra.mxu1 %v3276_v58  ;;  %1852 = vmatprep.subr.bf16.mxu0 %v3281_v59  ;;  %v3371_v58 = vld [vmem:[#allocation2 + $0x40c] ss:$16 sps:$4 sm:$0xff]  }
  0xbc   :  { %1893 = vmatprep.subr.bf16.mxu1 %v3284_v60  ;;  %v3374_v59 = vld [vmem:[#allocation2 + $0x60c] ss:$16 sps:$4 sm:$0xff]   ;;  %v3369_v60 = vld [vmem:[#allocation2 + $0x408] ss:$16 sps:$4 sm:$0xff]  }
  0xbe   :  { %1853 = vmatpush2.bf16.msra.mxu0 %v3279_v61  ;;  %v3372_v61 = vld [vmem:[#allocation2 + $0x608] ss:$16 sps:$4 sm:$0xff]  }
  0xbf   :  { %1894 = vmatpush2.bf16.msra.mxu1 %v3282_v0  ;;  %1854 = vmatprep.subr.bf16.mxu0 %v3287_v1  ;;  %v3377_v0 = vld [vmem:[#allocation2 + $0x5ec] ss:$16 sps:$4 sm:$0xff]  }
  0xc0   :  { %1895 = vmatprep.subr.bf16.mxu1 %v3290_v2  ;;  %v3380_v1 = vld [vmem:[#allocation2 + $0x7ec] ss:$16 sps:$4 sm:$0xff]   ;;  %v3375_v2 = vld [vmem:[#allocation2 + $0x5e8] ss:$16 sps:$4 sm:$0xff]  }
  0xc2   :  { %1855 = vmatpush2.bf16.msra.mxu0 %v3285_v4  ;;  %v3378_v4 = vld [vmem:[#allocation2 + $0x7e8] ss:$16 sps:$4 sm:$0xff]  }
  0xc3   :  { %1896 = vmatpush2.bf16.msra.mxu1 %v3288_v5  ;;  %1856 = vmatprep.subr.bf16.mxu0 %v3293_v6  ;;  %v3383_v5 = vld [vmem:[#allocation2 + $0x5cc] ss:$16 sps:$4 sm:$0xff]  }
  0xc4   :  { %1897 = vmatprep.subr.bf16.mxu1 %v3296_v7  ;;  %v3386_v6 = vld [vmem:[#allocation2 + $0x7cc] ss:$16 sps:$4 sm:$0xff]   ;;  %v3381_v7 = vld [vmem:[#allocation2 + $0x5c8] ss:$16 sps:$4 sm:$0xff]  }
  0xc6   :  { %1857 = vmatpush2.bf16.msra.mxu0 %v3291_v8  ;;  %v3384_v8 = vld [vmem:[#allocation2 + $0x7c8] ss:$16 sps:$4 sm:$0xff]  }
  0xc7   :  { %1898 = vmatpush2.bf16.msra.mxu1 %v3294_v9  ;;  %1858 = vmatprep.subr.bf16.mxu0 %v3299_v10  ;;  %v3389_v9 = vld [vmem:[#allocation2 + $0x5ac] ss:$16 sps:$4 sm:$0xff]  }
  0xc8   :  { %1899 = vmatprep.subr.bf16.mxu1 %v3302_v11  ;;  %v3392_v10 = vld [vmem:[#allocation2 + $0x7ac] ss:$16 sps:$4 sm:$0xff]   ;;  %v3387_v11 = vld [vmem:[#allocation2 + $0x5a8] ss:$16 sps:$4 sm:$0xff]  }
  0xca   :  { %1859 = vmatpush2.bf16.msra.mxu0 %v3297_v12  ;;  %v3390_v12 = vld [vmem:[#allocation2 + $0x7a8] ss:$16 sps:$4 sm:$0xff]  }
  0xcb   :  { %1900 = vmatpush2.bf16.msra.mxu1 %v3300_v13  ;;  %1860 = vmatprep.subr.bf16.mxu0 %v3305_v15  ;;  %v3395_v13 = vld [vmem:[#allocation2 + $0x58c] ss:$16 sps:$4 sm:$0xff]  }
  0xcc   :  { %1901 = vmatprep.subr.bf16.mxu1 %v3308_v16  ;;  %v3398_v15 = vld [vmem:[#allocation2 + $0x78c] ss:$16 sps:$4 sm:$0xff]   ;;  %v3393_v16 = vld [vmem:[#allocation2 + $0x588] ss:$16 sps:$4 sm:$0xff]  }
  0xce   :  { %1861 = vmatpush2.bf16.msra.mxu0 %v3303_v17  ;;  %v3396_v17 = vld [vmem:[#allocation2 + $0x788] ss:$16 sps:$4 sm:$0xff]  }
  0xcf   :  { %1902 = vmatpush2.bf16.msra.mxu1 %v3306_v20  ;;  %1862 = vmatprep.subr.bf16.mxu0 %v3311_v21  ;;  %v3401_v20 = vld [vmem:[#allocation2 + $0x56c] ss:$16 sps:$4 sm:$0xff]  }
  0xd0   :  { %1903 = vmatprep.subr.bf16.mxu1 %v3314_v22  ;;  %v3404_v21 = vld [vmem:[#allocation2 + $0x76c] ss:$16 sps:$4 sm:$0xff]   ;;  %v3399_v22 = vld [vmem:[#allocation2 + $0x568] ss:$16 sps:$4 sm:$0xff]  }
  0xd2   :  { %1863 = vmatpush2.bf16.msra.mxu0 %v3309_v23  ;;  %v3402_v23 = vld [vmem:[#allocation2 + $0x768] ss:$16 sps:$4 sm:$0xff]  }
  0xd3   :  { %1904 = vmatpush2.bf16.msra.mxu1 %v3312_v25  ;;  %1864 = vmatprep.subr.bf16.mxu0 %v3317_v26  ;;  %v3407_v25 = vld [vmem:[#allocation2 + $0x54c] ss:$16 sps:$4 sm:$0xff]  }
  0xd4   :  { %1905 = vmatprep.subr.bf16.mxu1 %v3320_v27  ;;  %v3410_v26 = vld [vmem:[#allocation2 + $0x74c] ss:$16 sps:$4 sm:$0xff]   ;;  %v3405_v27 = vld [vmem:[#allocation2 + $0x548] ss:$16 sps:$4 sm:$0xff]  }
  0xd6   :  { %1865 = vmatpush2.bf16.msra.mxu0 %v3315_v28  ;;  %v3408_v28 = vld [vmem:[#allocation2 + $0x748] ss:$16 sps:$4 sm:$0xff]  }
  0xd7   :  { %1906 = vmatpush2.bf16.msra.mxu1 %v3318_v30  ;;  %1866 = vmatprep.subr.bf16.mxu0 %v3323_v31  ;;  %v3413_v30 = vld [vmem:[#allocation2 + $0x52c] ss:$16 sps:$4 sm:$0xff]  }
  0xd8   :  { %1907 = vmatprep.subr.bf16.mxu1 %v3326_v32  ;;  %v3416_v31 = vld [vmem:[#allocation2 + $0x72c] ss:$16 sps:$4 sm:$0xff]   ;;  %v3411_v32 = vld [vmem:[#allocation2 + $0x528] ss:$16 sps:$4 sm:$0xff]  }
  0xda   :  { %1867 = vmatpush2.bf16.msra.mxu0 %v3321_v33  ;;  %v3414_v33 = vld [vmem:[#allocation2 + $0x728] ss:$16 sps:$4 sm:$0xff]  }
  0xdb   :  { %1908 = vmatpush2.bf16.msra.mxu1 %v3324_v34  ;;  %1918 = vmatprep.subr.bf16.mxu0 %v3329_v35  ;;  %v3419_v34 = vld [vmem:[#allocation2 + $0x50c] ss:$16 sps:$4 sm:$0xff]  }
  0xdc   :  { %1959 = vmatprep.subr.bf16.mxu1 %v3332_v36  ;;  %v3422_v35 = vld [vmem:[#allocation2 + $0x70c] ss:$16 sps:$4 sm:$0xff]   ;;  %v3417_v36 = vld [vmem:[#allocation2 + $0x508] ss:$16 sps:$4 sm:$0xff]  }
  0xdd   :  { %1869 = vmatmul.mubr.bf16.vlgmr.msra.gmra.mxu0 %v3648_v14  ;;  %v3350_v14 = vld [vmem:[#allocation2 + $0x68c] ss:$16 sps:$4 sm:$0xff]  }
  0xde   :  { %1910 = vmatmul.mubr.bf16.vlgmr.msra.gmra.mxu1 %v3654_v19  ;;  %1919 = vmatpush1.bf16.msra.mxu0 %v3327_v37  ;;  %v3348_v19 = vld [vmem:[#allocation2 + $0x688] ss:$16 sps:$4 sm:$0xff]  }
  0xdf   :  { %1960 = vmatpush1.bf16.msra.mxu1 %v3330_v38  ;;  %1920 = vmatprep.subr.bf16.mxu0 %v3335_v39  ;;  %v3420_v37 = vld [vmem:[#allocation2 + $0x708] ss:$16 sps:$4 sm:$0xff]   ;;  %v3425_v38 = vld [vmem:[#allocation4 + $0x74] ss:$8 sps:$4 sm:$0xff]  }
  0xe0   :  { %1961 = vmatprep.subr.bf16.mxu1 %v3338_v40  ;;  %1950 = vmatprep.mubr.bf16.mxu0 %v3650_v18  ;;  %v3362_v18 = vld [vmem:[#allocation2 + $0x64c] ss:$16 sps:$4 sm:$0xff]   ;;  %v3423_v39 = vld [vmem:[#allocation4 + $0x70] ss:$8 sps:$4 sm:$0xff]  }
  0xe1   :  { %1991 = vmatprep.mubr.bf16.mxu1 %v3658_v24  ;;  %v3357_v24 = vld [vmem:[#allocation2 + $0x448] ss:$16 sps:$4 sm:$0xff]   ;;  %v3428_v40 = vld [vmem:[#allocation4 + $0x64] ss:$8 sps:$4 sm:$0xff]  }
  0xe2   :  { %1921 = vmatpush1.bf16.msra.mxu0 %v3333_v41 }
  0xe3   :  { %1962 = vmatpush1.bf16.msra.mxu1 %v3336_v43  ;;  %1922 = vmatprep.subr.bf16.mxu0 %v3341_v44  ;;  %v3426_v44 = vld [vmem:[#allocation4 + $0x60] ss:$8 sps:$4 sm:$0xff]  }
  0xe4   :  { %1963 = vmatprep.subr.bf16.mxu1 %v3344_v45 }
  0xe6   :  { %1923 = vmatpush1.bf16.msra.mxu0 %v3339_v46 }
  0xe7   :  { %1964 = vmatpush1.bf16.msra.mxu1 %v3342_v47  ;;  %1924 = vmatprep.subr.bf16.mxu0 %v3347_v62  ;;  %v3431_v47 = vld [vmem:[#allocation4 + $0x54] ss:$8 sps:$4 sm:$0xff]  }
  0xe8   :  { %1965 = vmatprep.subr.bf16.mxu1 %v3350_v14 }
  0xea   :  { %1925 = vmatpush1.bf16.msra.mxu0 %v3345_v3  ;;  %v3429_v3 = vld [vmem:[#allocation4 + $0x50] ss:$8 sps:$4 sm:$0xff]  }
  0xeb   :  { %1966 = vmatpush1.bf16.msra.mxu1 %v3348_v19  ;;  %1926 = vmatprep.subr.bf16.mxu0 %v3353_v48 }
  0xec   :  { %1967 = vmatprep.subr.bf16.mxu1 %v3356_v49  ;;  %v3434_v49 = vld [vmem:[#allocation4 + $0x44] ss:$8 sps:$4 sm:$0xff]  }
  0xee   :  { %1927 = vmatpush1.bf16.msra.mxu0 %v3351_v50  ;;  %v3471_v50 = vld [vmem:[#allocation4 + $0x170] ss:$8 sps:$4 sm:$0xff]  }
  0xef   :  { %1968 = vmatpush1.bf16.msra.mxu1 %v3354_v51  ;;  %1928 = vmatprep.subr.bf16.mxu0 %v3359_v52  ;;  %v3476_v51 = vld [vmem:[#allocation4 + $0x164] ss:$8 sps:$4 sm:$0xff]   ;;  %v3474_v52 = vld [vmem:[#allocation4 + $0x160] ss:$8 sps:$4 sm:$0xff]  }
  0xf0   :  { %1969 = vmatprep.subr.bf16.mxu1 %v3362_v18  ;;  %v3437_v18 = vld [vmem:[#allocation4 + $0x34] ss:$8 sps:$4 sm:$0xff]  }
  0xf2   :  { %1929 = vmatpush1.bf16.msra.mxu0 %v3357_v24  ;;  %v3479_v24 = vld [vmem:[#allocation4 + $0x154] ss:$8 sps:$4 sm:$0xff]  }
  0xf3   :  { %1970 = vmatpush1.bf16.msra.mxu1 %v3360_v53  ;;  %1930 = vmatprep.subr.bf16.mxu0 %v3365_v54  ;;  %v3435_v53 = vld [vmem:[#allocation4 + $0x30] ss:$8 sps:$4 sm:$0xff]  }
  0xf4   :  { %1971 = vmatprep.subr.bf16.mxu1 %v3368_v55  ;;  %v3477_v54 = vld [vmem:[#allocation4 + $0x150] ss:$8 sps:$4 sm:$0xff]   ;;  %v3440_v55 = vld [vmem:[#allocation4 + $0x24] ss:$8 sps:$4 sm:$0xff]  }
  0xf6   :  { %1931 = vmatpush1.bf16.msra.mxu0 %v3363_v56  ;;  %v3482_v56 = vld [vmem:[#allocation4 + $0x144] ss:$8 sps:$4 sm:$0xff]  }
  0xf7   :  { %1972 = vmatpush1.bf16.msra.mxu1 %v3366_v57  ;;  %1932 = vmatprep.subr.bf16.mxu0 %v3371_v58  ;;  %v3438_v57 = vld [vmem:[#allocation4 + $0x20] ss:$8 sps:$4 sm:$0xff]  }
  0xf8   :  { %1973 = vmatprep.subr.bf16.mxu1 %v3374_v59  ;;  %v3480_v58 = vld [vmem:[#allocation4 + $0x140] ss:$8 sps:$4 sm:$0xff]   ;;  %v3443_v59 = vld [vmem:[#allocation4 + $0x14] ss:$8 sps:$4 sm:$0xff]  }
  0xfa   :  { %1933 = vmatpush1.bf16.msra.mxu0 %v3369_v60  ;;  %v3485_v60 = vld [vmem:[#allocation4 + $0x134] ss:$8 sps:$4 sm:$0xff]  }
  0xfb   :  { %1974 = vmatpush1.bf16.msra.mxu1 %v3372_v61  ;;  %1934 = vmatprep.subr.bf16.mxu0 %v3377_v0  ;;  %v3441_v61 = vld [vmem:[#allocation4 + $0x10] ss:$8 sps:$4 sm:$0xff]  }
  0xfc   :  { %1975 = vmatprep.subr.bf16.mxu1 %v3380_v1  ;;  %v3483_v0 = vld [vmem:[#allocation4 + $0x130] ss:$8 sps:$4 sm:$0xff]   ;;  %v3446_v1 = vld [vmem:[#allocation4 + $0x4] ss:$8 sps:$4 sm:$0xff]  }
  0xfe   :  { %1935 = vmatpush2.bf16.msra.mxu0 %v3375_v2  ;;  %v3488_v2 = vld [vmem:[#allocation4 + $0x124] ss:$8 sps:$4 sm:$0xff]  }
  0xff   :  { %1976 = vmatpush2.bf16.msra.mxu1 %v3378_v4  ;;  %1936 = vmatprep.subr.bf16.mxu0 %v3383_v5  ;;  %v3444_v4 = vld [vmem:[#allocation4] ss:$8 sps:$4 sm:$0xff]  }
 0x100   :  { %1977 = vmatprep.subr.bf16.mxu1 %v3386_v6  ;;  %v3486_v5 = vld [vmem:[#allocation4 + $0x120] ss:$8 sps:$4 sm:$0xff]   ;;  %v3449_v6 = vld [vmem:[#allocation4 + $0xf4] ss:$8 sps:$4 sm:$0xff]  }
 0x102   :  { %1937 = vmatpush2.bf16.msra.mxu0 %v3381_v7  ;;  %v3491_v7 = vld [vmem:[#allocation4 + $0x114] ss:$8 sps:$4 sm:$0xff]  }
 0x103   :  { %1978 = vmatpush2.bf16.msra.mxu1 %v3384_v8  ;;  %1938 = vmatprep.subr.bf16.mxu0 %v3389_v9  ;;  %v3447_v8 = vld [vmem:[#allocation4 + $0xf0] ss:$8 sps:$4 sm:$0xff]  }
 0x104   :  { %1979 = vmatprep.subr.bf16.mxu1 %v3392_v10  ;;  %v3489_v9 = vld [vmem:[#allocation4 + $0x110] ss:$8 sps:$4 sm:$0xff]   ;;  %v3452_v10 = vld [vmem:[#allocation4 + $0xe4] ss:$8 sps:$4 sm:$0xff]  }
 0x106   :  { %1939 = vmatpush2.bf16.msra.mxu0 %v3387_v11  ;;  %v3494_v11 = vld [vmem:[#allocation4 + $0x104] ss:$8 sps:$4 sm:$0xff]  }
 0x107   :  { %1980 = vmatpush2.bf16.msra.mxu1 %v3390_v12  ;;  %1940 = vmatprep.subr.bf16.mxu0 %v3395_v13  ;;  %v3450_v12 = vld [vmem:[#allocation4 + $0xe0] ss:$8 sps:$4 sm:$0xff]  }
 0x108   :  { %1981 = vmatprep.subr.bf16.mxu1 %v3398_v15  ;;  %v3492_v13 = vld [vmem:[#allocation4 + $0x100] ss:$8 sps:$4 sm:$0xff]   ;;  %v3455_v15 = vld [vmem:[#allocation4 + $0xd4] ss:$8 sps:$4 sm:$0xff]  }
 0x10a   :  { %1941 = vmatpush2.bf16.msra.mxu0 %v3393_v16  ;;  %v3497_v16 = vld [vmem:[#allocation4 + $0x1f4] ss:$8 sps:$4 sm:$0xff]  }
 0x10b   :  { %1982 = vmatpush2.bf16.msra.mxu1 %v3396_v17  ;;  %1942 = vmatprep.subr.bf16.mxu0 %v3401_v20  ;;  %v3453_v17 = vld [vmem:[#allocation4 + $0xd0] ss:$8 sps:$4 sm:$0xff]  }
 0x10c   :  { %1983 = vmatprep.subr.bf16.mxu1 %v3404_v21  ;;  %v3495_v20 = vld [vmem:[#allocation4 + $0x1f0] ss:$8 sps:$4 sm:$0xff]   ;;  %v3458_v21 = vld [vmem:[#allocation4 + $0xc4] ss:$8 sps:$4 sm:$0xff]  }
 0x10e   :  { %1943 = vmatpush2.bf16.msra.mxu0 %v3399_v22  ;;  %v3500_v22 = vld [vmem:[#allocation4 + $0x1e4] ss:$8 sps:$4 sm:$0xff]  }
 0x10f   :  { %1984 = vmatpush2.bf16.msra.mxu1 %v3402_v23  ;;  %1944 = vmatprep.subr.bf16.mxu0 %v3407_v25  ;;  %v3456_v23 = vld [vmem:[#allocation4 + $0xc0] ss:$8 sps:$4 sm:$0xff]  }
 0x110   :  { %1985 = vmatprep.subr.bf16.mxu1 %v3410_v26  ;;  %v3498_v25 = vld [vmem:[#allocation4 + $0x1e0] ss:$8 sps:$4 sm:$0xff]   ;;  %v3461_v26 = vld [vmem:[#allocation4 + $0xb4] ss:$8 sps:$4 sm:$0xff]  }
 0x112   :  { %1945 = vmatpush2.bf16.msra.mxu0 %v3405_v27  ;;  %v3503_v27 = vld [vmem:[#allocation4 + $0x1d4] ss:$8 sps:$4 sm:$0xff]  }
 0x113   :  { %1986 = vmatpush2.bf16.msra.mxu1 %v3408_v28  ;;  %1946 = vmatprep.subr.bf16.mxu0 %v3413_v30  ;;  %v3459_v28 = vld [vmem:[#allocation4 + $0xb0] ss:$8 sps:$4 sm:$0xff]  }
 0x114   :  { %1987 = vmatprep.subr.bf16.mxu1 %v3416_v31  ;;  %v3501_v30 = vld [vmem:[#allocation4 + $0x1d0] ss:$8 sps:$4 sm:$0xff]   ;;  %v3464_v31 = vld [vmem:[#allocation4 + $0xa4] ss:$8 sps:$4 sm:$0xff]  }
 0x116   :  { %1947 = vmatpush2.bf16.msra.mxu0 %v3411_v32  ;;  %v3506_v32 = vld [vmem:[#allocation4 + $0x1c4] ss:$8 sps:$4 sm:$0xff]  }
 0x117   :  { %1988 = vmatpush2.bf16.msra.mxu1 %v3414_v33  ;;  %1948 = vmatprep.subr.bf16.mxu0 %v3419_v34  ;;  %v3462_v33 = vld [vmem:[#allocation4 + $0xa0] ss:$8 sps:$4 sm:$0xff]  }
 0x118   :  { %1989 = vmatprep.subr.bf16.mxu1 %v3422_v35  ;;  %v3504_v34 = vld [vmem:[#allocation4 + $0x1c0] ss:$8 sps:$4 sm:$0xff]   ;;  %v3467_v35 = vld [vmem:[#allocation4 + $0x94] ss:$8 sps:$4 sm:$0xff]  }
 0x11a   :  { %1949 = vmatpush2.bf16.msra.mxu0 %v3417_v36  ;;  %v3509_v36 = vld [vmem:[#allocation4 + $0x1b4] ss:$8 sps:$4 sm:$0xff]  }
 0x11b   :  { %1990 = vmatpush2.bf16.msra.mxu1 %v3420_v37  ;;  %2404 = vmatprep.subr.bf16.mxu0 %v3425_v38  ;;  %v316_v37 = vsub.s32 0, %v3632_v42  ;;  %v3690_v38 = vld [vmem:[%s3770_s2] sm:$0xf] }
 0x11d   :  { %v3676_v41 = vpop.f32.mrf.mxu0  ;;  %1951 = vmatmul.mubr.bf16.vlgmr.msra.gmra.mxu0 %v3640_v63  ;;  %v3473_v63 = vld [vmem:[#allocation4 + $0x174] ss:$8 sps:$4 sm:$0xff]  }
 0x11e   :  { %v3678_v43 = vpop.f32.mrf.mxu1  ;;  %1992 = vmatmul.mubr.bf16.vlgmr.msra.gmra.mxu1 %v3666_v29  ;;  %2405 = vmatpush1.bf16.msra.mxu0 %v3423_v39  ;;  %v3432_v29 = vld [vmem:[#allocation4 + $0x40] ss:$8 sps:$4 sm:$0xff]   ;;  %v320_v39 = vsub.s32 1, %v3632_v42 }
 0x11f   :  { %v3682_v45 = vpop.f32.mrf.mxu0  ;;  %2406 = vmatprep.subr.bf16.mxu0 %v3428_v40  ;;  %2445 = vmatprep.subr.bf16.mxu1 %v3473_v63  ;;  %v3465_v40 = vld [vmem:[#allocation4 + $0x90] ss:$8 sps:$4 sm:$0xff]   ;;  %v3510_v63 = vld [vmem:[#allocation4 + $0x1a0] ss:$8 sps:$4 sm:$0xff]  }
 0x120   :  { %v3684_v46 = vpop.f32.mrf.mxu1  ;;  %2446 = vmatpush1.bf16.msra.mxu1 %v3471_v50 }
 0x121   :  { %v1710_v62 = vpop.f32.mrf.mxu0  ;;  %2447 = vmatprep.subr.bf16.mxu1 %v3476_v51 }
 0x122   :  { %v1751_v14 = vpop.f32.mrf.mxu1  ;;  %2407 = vmatpush1.bf16.msra.mxu0 %v3426_v44  ;;  %v3507_v44 = vld [vmem:[#allocation4 + $0x1b0] ss:$8 sps:$4 sm:$0xff]   ;;  %v317_v62 = vrot.slane %v3690_v38, %v316_v37 }
 0x123   :  { %v1711_v19 = vpop.f32.mrf.mxu0  ;;  %2408 = vmatprep.subr.bf16.mxu0 %v3431_v47  ;;  %v3470_v47 = vld [vmem:[#allocation4 + $0x84] ss:$8 sps:$4 sm:$0xff]   ;;  %v321_v14 = vrot.slane %v3690_v38, %v320_v39 }
 0x124   :  { %v1752_v48 = vpop.f32.mrf.mxu1  ;;  %2448 = vmatpush1.bf16.msra.mxu1 %v3474_v52  ;;  %v1707_v19 = vadd.f32 %v3676_v41, %v317_v62  ;;  %v3513_v41 = vld [vmem:[#allocation4 + $0x190] ss:$8 sps:$4 sm:$0xff]  }
 0x125   :  { %2449 = vmatprep.subr.bf16.mxu1 %v3479_v24  ;;  %v1709_v48 = vadd.f32 %v3682_v45, %v321_v14 }
 0x126   :  { %2409 = vmatpush1.bf16.msra.mxu0 %v3429_v3  ;;  %v3468_v3 = vld [vmem:[#allocation4 + $0x80] ss:$8 sps:$4 sm:$0xff]   ;;  %v1748_v50 = vadd.f32 %v3678_v43, %v1707_v19 }
 0x127   :  { %2410 = vmatprep.subr.bf16.mxu0 %v3434_v49  ;;  %v3512_v49 = vld [vmem:[#allocation4 + $0x1a4] ss:$8 sps:$4 sm:$0xff]   ;;  %v1750_v52 = vadd.f32 %v3684_v46, %v1709_v48 }
 0x128   :  { %2450 = vmatpush1.bf16.msra.mxu1 %v3477_v54  ;;  %v3515_v54 = vld [vmem:[#allocation4 + $0x194] ss:$8 sps:$4 sm:$0xff]  }
 0x129   :  { %2451 = vmatprep.subr.bf16.mxu1 %v3482_v56 }
 0x12a   :  { %2411 = vmatpush1.bf16.msra.mxu0 %v3432_v29 }
 0x12b   :  { %2412 = vmatprep.subr.bf16.mxu0 %v3437_v18 }
 0x12c   :  { %2452 = vmatpush1.bf16.msra.mxu1 %v3480_v58 }
 0x12d   :  { %2453 = vmatprep.subr.bf16.mxu1 %v3485_v60 }
 0x12e   :  { %2413 = vmatpush1.bf16.msra.mxu0 %v3435_v53 }
 0x12f   :  { %2414 = vmatprep.subr.bf16.mxu0 %v3440_v55 }
 0x130   :  { %2454 = vmatpush1.bf16.msra.mxu1 %v3483_v0 }
 0x131   :  { %2455 = vmatprep.subr.bf16.mxu1 %v3488_v2 }
 0x132   :  { %2415 = vmatpush1.bf16.msra.mxu0 %v3438_v57 }
 0x133   :  { %2416 = vmatprep.subr.bf16.mxu0 %v3443_v59 }
 0x134   :  { %2456 = vmatpush1.bf16.msra.mxu1 %v3486_v5 }
 0x135   :  { %2457 = vmatprep.subr.bf16.mxu1 %v3491_v7 }
 0x136   :  { %2417 = vmatpush1.bf16.msra.mxu0 %v3441_v61  ;;  %v3518_v61 = vld [vmem:[#allocation4 + $0x184] ss:$8 sps:$4 sm:$0xff]  }
 0x137   :  { %2418 = vmatprep.subr.bf16.mxu0 %v3446_v1  ;;  %v3516_v1 = vld [vmem:[#allocation4 + $0x180] ss:$8 sps:$4 sm:$0xff]  }
 0x138   :  { %2458 = vmatpush1.bf16.msra.mxu1 %v3489_v9 }
 0x139   :  { %2459 = vmatprep.subr.bf16.mxu1 %v3494_v11 }
 0x13a   :  { %2419 = vmatpush1.bf16.msra.mxu0 %v3444_v4 }
 0x13b   :  { %2420 = vmatprep.subr.bf16.mxu0 %v3449_v6 }
 0x13c   :  { %2460 = vmatpush1.bf16.msra.mxu1 %v3492_v13  ;;  %v3520_v13 = vld [vmem:[%s3773_s5 + $0x38] sm:$0xff]  }
 0x13d   :  { %2461 = vmatprep.subr.bf16.mxu1 %v3497_v16  ;;  %v3522_v16 = vld [vmem:[%s3773_s5 + $0x30] sm:$0xff]  }
 0x13e   :  { %2421 = vmatpush2.bf16.msra.mxu0 %v3447_v8 }
 0x13f   :  { %2422 = vmatprep.subr.bf16.mxu0 %v3452_v10 }
 0x140   :  { %2462 = vmatpush2.bf16.msra.mxu1 %v3495_v20  ;;  %v3524_v20 = vld [vmem:[%s3773_s5 + $0x28] sm:$0xff]  }
 0x141   :  { %2463 = vmatprep.subr.bf16.mxu1 %v3500_v22  ;;  %v3526_v22 = vld [vmem:[%s3773_s5 + $0x20] sm:$0xff]  }
 0x142   :  { %2423 = vmatpush2.bf16.msra.mxu0 %v3450_v12  ;;  %v3519_v12 = vld [vmem:[%s3773_s5 + $0x78] sm:$0xff]  }
 0x143   :  { %2424 = vmatprep.subr.bf16.mxu0 %v3455_v15  ;;  %v3521_v15 = vld [vmem:[%s3773_s5 + $0x70] sm:$0xff]  }
 0x144   :  { %2464 = vmatpush2.bf16.msra.mxu1 %v3498_v25  ;;  %v3528_v25 = vld [vmem:[%s3773_s5 + $0x18] sm:$0xff]  }
 0x145   :  { %2465 = vmatprep.subr.bf16.mxu1 %v3503_v27  ;;  %v3530_v27 = vld [vmem:[%s3773_s5 + $0x10] sm:$0xff]  }
 0x146   :  { %2425 = vmatpush2.bf16.msra.mxu0 %v3453_v17  ;;  %v3523_v17 = vld [vmem:[%s3773_s5 + $0x68] sm:$0xff]  }
 0x147   :  { %2426 = vmatprep.subr.bf16.mxu0 %v3458_v21  ;;  %v3525_v21 = vld [vmem:[%s3773_s5 + $0x60] sm:$0xff]  }
 0x148   :  { %2466 = vmatpush2.bf16.msra.mxu1 %v3501_v30  ;;  %v328_v30 = vsub.s32 3, %v3632_v42 }
 0x149   :  { %2467 = vmatprep.subr.bf16.mxu1 %v3506_v32 }
 0x14a   :  { %2427 = vmatpush2.bf16.msra.mxu0 %v3456_v23  ;;  %v3527_v23 = vld [vmem:[%s3773_s5 + $0x58] sm:$0xff]   ;;  %v329_v32 = vrot.slane %v3690_v38, %v328_v30 }
 0x14b   :  { %2428 = vmatprep.subr.bf16.mxu0 %v3461_v26  ;;  %v3529_v26 = vld [vmem:[%s3773_s5 + $0x50] sm:$0xff]  }
 0x14c   :  { %2468 = vmatpush2.bf16.msra.mxu1 %v3504_v34 }
 0x14d   :  { %2469 = vmatprep.subr.bf16.mxu1 %v3509_v36 }
 0x14e   :  { %2429 = vmatpush2.bf16.msra.mxu0 %v3459_v28  ;;  %v324_v28 = vsub.s32 2, %v3632_v42  ;;  %v2992_v42 = vld [vmem:[%s3774_s6] ss:$0 sm:$0xff] }
 0x14f   :  { %2430 = vmatprep.subr.bf16.mxu0 %v3464_v31 }
 0x150   :  { %2470 = vmatpush2.bf16.msra.mxu1 %v3507_v44  ;;  %v325_v31 = vrot.slane %v3690_v38, %v324_v28 }
 0x151   :  { %2471 = vmatprep.subr.bf16.mxu1 %v3512_v49 }
 0x152   :  { %2431 = vmatpush2.bf16.msra.mxu0 %v3462_v33 }
 0x153   :  { %2432 = vmatprep.subr.bf16.mxu0 %v3467_v35 }
 0x154   :  { %2472 = vmatpush2.bf16.msra.mxu1 %v3510_v63 }
 0x155   :  { %2473 = vmatprep.subr.bf16.mxu1 %v3515_v54  ;;  %v3532_v54 = vld [vmem:[%s3773_s5 + $0x8] sm:$0xff]  }
 0x156   :  { %2433 = vmatpush2.bf16.msra.mxu0 %v3465_v40 }
 0x157   :  { %2434 = vmatprep.subr.bf16.mxu0 %v3470_v47 }
 0x158   :  { %2474 = vmatpush2.bf16.msra.mxu1 %v3513_v41  ;;  %v3533_v41 = vld [vmem:[%s3773_s5 + $0x40] sm:$0xff]  }
 0x159   :  { %2475 = vmatprep.subr.bf16.mxu1 %v3518_v61 }
 0x15a   :  { %2435 = vmatpush2.bf16.msra.mxu0 %v3468_v3 }
 0x15b   :  { %3009 = vmatprep.subr.bf16.mxu0 %v3519_v12 }
 0x15c   :  { %2476 = vmatpush2.bf16.msra.mxu1 %v3516_v1 }
 0x15d   :  { %v1788_v51 = vpop.f32.mrf.mxu0 }
 0x15e   :  { %v1829_v29 = vpop.f32.mrf.mxu1  ;;  %v1789_v18 = vadd.f32 %v1788_v51, %v1748_v50 }
 0x15f   :  { %v1790_v24 = vpop.f32.mrf.mxu0 }
 0x160   :  { %v1831_v53 = vpop.f32.mrf.mxu1  ;;  %v1830_v55 = vadd.f32 %v1829_v29, %v1789_v18  ;;  %v1791_v56 = vadd.f32 %v1790_v24, %v1750_v52 }
 0x161   :  { %v1792_v57 = vpop.f32.mrf.mxu0 }
 0x162   :  { %v1833_v45 = vpop.f32.mrf.mxu1  ;;  %v1832_v58 = vadd.f32 %v1831_v53, %v1791_v56  ;;  %v2000_v43 = vmax.f32 %v1830_v55, 0.0  ;;  %v3531_v53 = vld [vmem:[%s3773_s5 + $0x48] sm:$0xff]   ;;  %v3534_v57 = vld [vmem:[%s3773_s5] sm:$0xff]  }
 0x163   :  { %v1793_v59 = vpop.f32.mrf.mxu0 }
 0x164   :  { %v1834_v60 = vpop.f32.mrf.mxu1  ;;  %v2001_v0 = vmax.f32 %v1832_v58, 0.0  ;;  %v2004_v2 = vpack.c.bf16 %v2000_v43, %v2000_v43  ;;  %v2072_v58 = vld [vmem:[%s3772_s4] sm:$0x3] }
 0x165   :  { %v2077_v43 = vrot.slane %v2072_v58, %v316_v37  ;;  %v2081_v59 = vrot.slane %v2072_v58, %v320_v39 }
 0x166   :  { %v2005_v46 = vpack.c.bf16 %v2001_v0, %v2001_v0 }
 0x168   :  { %2436 = vmatprep.mubr.bf16.mxu0 %v2005_v46 }
 0x169   :  { %2437 = vmatmul.mubr.bf16.vlgmr.msra.gmra.mxu0 %v2004_v2 }
 0x16a   :  { %3010 = vmatpush3.bf16.msra.mxu0 %v3520_v13 }
 0x16b   :  { %3011 = vmatprep.subr.bf16.mxu0 %v3521_v15 }
 0x16e   :  { %3012 = vmatpush3.bf16.msra.mxu0 %v3522_v16 }
 0x16f   :  { %3013 = vmatprep.subr.bf16.mxu0 %v3523_v17 }
 0x172   :  { %3014 = vmatpush3.bf16.msra.mxu0 %v3524_v20 }
 0x173   :  { %3015 = vmatprep.subr.bf16.mxu0 %v3525_v21 }
 0x176   :  { %3016 = vmatpush3.bf16.msra.mxu0 %v3526_v22 }
 0x177   :  { %3017 = vmatprep.subr.bf16.mxu0 %v3527_v23 }
 0x17a   :  { %3018 = vmatpush3.bf16.msra.mxu0 %v3528_v25 }
 0x17b   :  { %3019 = vmatprep.subr.bf16.mxu0 %v3529_v26 }
 0x17e   :  { %3020 = vmatpush3.bf16.msra.mxu0 %v3530_v27 }
 0x17f   :  { %3021 = vmatprep.subr.bf16.mxu0 %v3531_v53 }
 0x182   :  { %3022 = vmatpush3.bf16.msra.mxu0 %v3532_v54 }
 0x183   :  { %3023 = vmatprep.subr.bf16.mxu0 %v3533_v41 }
 0x186   :  { %3024 = vmatpush3.bf16.msra.mxu0 %v3534_v57 }
 0x19d   :  { %v1870_v4 = vpop.f32.mrf.mxu0 }
 0x19e   :  { %v1911_v5 = vpop.f32.mrf.mxu1  ;;  %v1871_v33 = vadd.f32 %v1870_v4, %v325_v31 }
 0x19f   :  { %v1872_v6 = vpop.f32.mrf.mxu0 }
 0x1a0   :  { %v1913_v7 = vpop.f32.mrf.mxu1  ;;  %v1873_v34 = vadd.f32 %v1872_v6, %v329_v32  ;;  %v1912_v35 = vadd.f32 %v1911_v5, %v1871_v33 }
 0x1a1   :  { %v1874_v8 = vpop.f32.mrf.mxu0 }
 0x1a2   :  { %v1915_v9 = vpop.f32.mrf.mxu1  ;;  %v1914_v44 = vadd.f32 %v1913_v7, %v1873_v34 }
 0x1a3   :  { %v1875_v10 = vpop.f32.mrf.mxu0 }
 0x1a4   :  { %v1916_v11 = vpop.f32.mrf.mxu1 }
 0x1dd   :  { %v1952_v36 = vpop.f32.mrf.mxu0 }
 0x1de   :  { %v1993_v40 = vpop.f32.mrf.mxu1  ;;  %v1953_v47 = vadd.f32 %v1952_v36, %v1912_v35 }
 0x1df   :  { %v1954_v62 = vpop.f32.mrf.mxu0 }
 0x1e0   :  { %v1995_v14 = vpop.f32.mrf.mxu1  ;;  %v1994_v3 = vadd.f32 %v1993_v40, %v1953_v47  ;;  %v1955_v19 = vadd.f32 %v1954_v62, %v1914_v44 }
 0x1e1   :  { %v1956_v48 = vpop.f32.mrf.mxu0 }
 0x1e2   :  { %v1997_v49 = vpop.f32.mrf.mxu1  ;;  %v1996_v50 = vadd.f32 %v1995_v14, %v1955_v19  ;;  %v2002_v63 = vmax.f32 %v1994_v3, 0.0 }
 0x1e3   :  { %v1957_v51 = vpop.f32.mrf.mxu0 }
 0x1e4   :  { %v1998_v29 = vpop.f32.mrf.mxu1  ;;  %v2003_v52 = vmax.f32 %v1996_v50, 0.0  ;;  %v2006_v38 = vpack.c.bf16 %v2002_v63, %v2002_v63 }
 0x1e6   :  { %v2007_v18 = vpack.c.bf16 %v2003_v52, %v2003_v52 }
 0x1e8   :  { %2477 = vmatprep.mubr.bf16.mxu1 %v2007_v18 }
 0x1e9   :  { %2478 = vmatmul.mubr.bf16.vlgmr.msra.gmra.mxu1 %v2006_v38 }
 0x229   :  { %v2438_v24 = vpop.f32.mrf.mxu0 }
 0x22a   :  { %v2439_v60 = vadd.f32 %v2438_v24, %v2077_v43 }
 0x22b   :  { %v2440_v55 = vpop.f32.mrf.mxu0 }
 0x22c   :  { %v2441_v0 = vadd.f32 %v2440_v55, %v2081_v59 }
 0x22d   :  { %v2442_v56 = vpop.f32.mrf.mxu0 }
 0x22f   :  { %v2443_v45 = vpop.f32.mrf.mxu0 }
 0x2a9   :  { %v2479_v61 = vpop.f32.mrf.mxu1 }
 0x2aa   :  { %v2480_v1 = vadd.f32 %v2479_v61, %v2439_v60 }
 0x2ab   :  { %v2481_v46 = vpop.f32.mrf.mxu1 }
 0x2ac   :  { %v2482_v2 = vadd.f32 %v2481_v46, %v2441_v0  ;;  %v2486_v4 = vmax.f32 %v2480_v1, 0.0 }
 0x2ad   :  { %v2483_v5 = vpop.f32.mrf.mxu1 }
 0x2ae   :  { %v2487_v6 = vmax.f32 %v2482_v2, 0.0  ;;  %v2488_v9 = vpack.c.bf16 %v2486_v4, %v2486_v4 }
 0x2af   :  { %v2484_v7 = vpop.f32.mrf.mxu1 }
 0x2b0   :  { %v2489_v8 = vpack.c.bf16 %v2487_v6, %v2487_v6 }
 0x2b2   :  { %2657 = vmatprep.mubr.bf16.mxu0 %v2489_v8 }
 0x2b3   :  { %2658 = vmatmul.mubr.bf16.vlgmr.msra.gmra.mxu0 %v2488_v9 }
 0x373   :  { %v3025_v10 = vpop.f32.mrf.mxu0 }
 0x375   :  { %v3026_v37 = vpop.f32.mrf.mxu0 }
 0x376   :  { %v3027_v39 = vadd.f32 %v3026_v37, %v3025_v10 }
 0x377   :  { %v3028_v11 = vpop.f32.mrf.mxu0 }
 0x378   :  { %v2660_v12 = vadd.f32 %v3027_v39, %v2992_v42 }
 0x379   :  { %v3029_v13 = vpop.f32.mrf.mxu0 }
 0x37a   :  { %2665 = vst [vmem:[%s3775_s7] sm:$0x3] %v2660_v12 }
 0x37b   :  { %2670 = vsyncpa [#allocation3], 1 }
 0x37c   :  { %2671 = vsyncpa [#allocation5], 1 }

</bundles_post_ra>
